<compile_context>
chip_gen: v7x
topology: tpu7x:2x2x1
jax: 0.10.0
libtpu: 0.0.40
codegen_flags: <defaults>
</compile_context>

<pallas_src>
import functools

import jax
import jax.numpy as jnp
from jax import lax
from jax.experimental import pallas as pl
from jax.experimental.pallas import tpu as pltpu


def _round_up(x, m):
    return ((x + m - 1) // m) * m


def _pad_gates_cols(w, Hp):
    """Pad the trailing 4H axis gate-wise to 4*Hp (PyTorch gate order i,f,g,o)."""
    *lead, four_h = w.shape
    H = four_h // 4
    w4 = w.reshape(*lead, 4, H)
    pad = [(0, 0)] * len(lead) + [(0, 0), (0, Hp - H)]
    return jnp.pad(w4, pad).reshape(*lead, 4 * Hp)


# --------------------------------------------------------------------------
# Kernel A: batched input projection  gates_x = X @ W_ih + (b_ih + b_hh)
# --------------------------------------------------------------------------
def _input_proj_kernel(x_ref, wih_ref, b_ref, gx_ref):
    gx_ref[...] = (
        jnp.dot(x_ref[...], wih_ref[...], preferred_element_type=jnp.float32)
        + b_ref[...]
    )


# --------------------------------------------------------------------------
# Kernel B: recurrence (h @ W_hh + gates_x -> nonlinearities) + fused Linear
# --------------------------------------------------------------------------
def _lstm_recurrent_kernel(gx_ref, whh_ref, fcw_ref, fcb_ref, h0_ref, c0_ref,
                           out_ref, h_s, c_s, *, Tc, T, Bp, Hp):
    chunk = pl.program_id(0)

    @pl.when(chunk == 0)
    def _():
        h_s[...] = jnp.broadcast_to(h0_ref[...], (Bp, Hp))
        c_s[...] = jnp.broadcast_to(c0_ref[...], (Bp, Hp))

    whh = whh_ref[...]                     # (Hp, 4Hp) bf16, loaded once per chunk

    def step(i, carry):
        h, c = carry
        row = pl.multiple_of(i * Bp, 8)
        gx = gx_ref[pl.ds(row, Bp), :]     # (Bp, 4Hp) precomputed x-projection
        g = gx + jnp.dot(h.astype(jnp.bfloat16), whh,
                         preferred_element_type=jnp.float32)
        # PyTorch gate order: i, f, g, o (lane-aligned slices, Hp % 128 == 0)
        i_g = jax.nn.sigmoid(g[:, 0 * Hp:1 * Hp])
        f_g = jax.nn.sigmoid(g[:, 1 * Hp:2 * Hp])
        g_g = jnp.tanh(g[:, 2 * Hp:3 * Hp])
        o_g = jax.nn.sigmoid(g[:, 3 * Hp:4 * Hp])
        c_new = f_g * c + i_g * g_g
        h_new = o_g * jnp.tanh(c_new)
        if T % Tc == 0:                    # static: no tail masking needed
            return h_new, c_new
        valid = (chunk * Tc + i) < T       # mask padded tail timesteps
        return jnp.where(valid, h_new, h), jnp.where(valid, c_new, c)

    h, c = lax.fori_loop(0, Tc, step, (h_s[...], c_s[...]), unroll=True)
    h_s[...] = h
    c_s[...] = c

    # Last chunk: Dropout (identity in eval) + fully-connected layer.
    # TODO(synk): Dropout(p=0.2) training-mode RNG mask not implemented (eval no-op).
    @pl.when(chunk == pl.num_programs(0) - 1)
    def _():
        out_ref[...] = (
            jnp.dot(h.astype(jnp.bfloat16), fcw_ref[...],
                    preferred_element_type=jnp.float32)
            + fcb_ref[...]
        ).astype(out_ref.dtype)


# --------------------------------------------------------------------------
# Wrapper
# --------------------------------------------------------------------------
def lstm_forward(x, params, binary=False, time_chunk=32):
    """x: (B, T, F) float32. params: dict of LSTM + FC weights (pre-transposed)."""
    B, T, F = x.shape
    H = params["w_hh"].shape[0]            # (H, 4H)
    O = params["fc_w"].shape[1]            # (H, O)

    # lane / sublane friendly padded sizes
    Bp = _round_up(B, 8)
    Fp = _round_up(F, 128)
    Hp = _round_up(H, 128)
    Op = _round_up(O, 128)
    Tc = min(time_chunk, T)
    Tp = _round_up(T, Tc)
    n_chunks = Tp // Tc

    # --- parameter preparation (would normally be done once at init) --------
    wih_p = jnp.pad(_pad_gates_cols(params["w_ih"], Hp),
                    ((0, Fp - F), (0, 0))).astype(jnp.bfloat16)
    whh_p = jnp.pad(_pad_gates_cols(params["w_hh"], Hp),
                    ((0, Hp - H), (0, 0))).astype(jnp.bfloat16)
    bias_p = _pad_gates_cols((params["b_ih"] + params["b_hh"]).reshape(1, 4 * H),
                             Hp).astype(jnp.float32)
    fcw_p = jnp.pad(params["fc_w"], ((0, Hp - H), (0, Op - O))).astype(jnp.bfloat16)
    fcb_p = jnp.pad(params["fc_b"].reshape(1, O),
                    ((0, 0), (0, Op - O))).astype(jnp.float32)
    h0_p = jnp.pad(params["h0"].reshape(1, H), ((0, 0), (0, Hp - H))).astype(jnp.float32)
    c0_p = jnp.pad(params["c0"].reshape(1, H), ((0, 0), (0, Hp - H))).astype(jnp.float32)

    # x: (B, T, F) -> time-major (Tp, Bp, Fp) -> flat (Tp*Bp, Fp) bf16
    x_t = jnp.transpose(x, (1, 0, 2))
    x_t = jnp.pad(x_t, ((0, Tp - T), (0, Bp - B), (0, Fp - F)))
    x_flat = x_t.reshape(Tp * Bp, Fp).astype(jnp.bfloat16)

    # --- Kernel A: one big (Tp*Bp, Fp) x (Fp, 4Hp) GEMM over all timesteps ---
    gates_x = pl.pallas_call(
        _input_proj_kernel,
        out_shape=jax.ShapeDtypeStruct((Tp * Bp, 4 * Hp), jnp.float32),
        grid_spec=pltpu.PrefetchScalarGridSpec(
            num_scalar_prefetch=0,
            grid=(n_chunks,),
            in_specs=[
                pl.BlockSpec((Tc * Bp, Fp), lambda i: (i, 0)),       # x chunk
                pl.BlockSpec((Fp, 4 * Hp), lambda i: (0, 0)),        # W_ih^T
                pl.BlockSpec((1, 4 * Hp), lambda i: (0, 0)),         # bias
            ],
            out_specs=pl.BlockSpec((Tc * Bp, 4 * Hp), lambda i: (i, 0)),
        ),
        compiler_params=pltpu.CompilerParams(
            dimension_semantics=("parallel",)),
    )(x_flat, wih_p, bias_p)

    # --- Kernel B: serial recurrence over time chunks + fused FC ------------
    kernel = functools.partial(_lstm_recurrent_kernel, Tc=Tc, T=T, Bp=Bp, Hp=Hp)
    out_p = pl.pallas_call(
        kernel,
        out_shape=jax.ShapeDtypeStruct((Bp, Op), jnp.float32),
        grid_spec=pltpu.PrefetchScalarGridSpec(
            num_scalar_prefetch=0,
            grid=(n_chunks,),
            in_specs=[
                pl.BlockSpec((Tc * Bp, 4 * Hp), lambda i: (i, 0)),   # gates_x chunk
                pl.BlockSpec((Hp, 4 * Hp), lambda i: (0, 0)),        # W_hh^T
                pl.BlockSpec((Hp, Op), lambda i: (0, 0)),            # fc W^T
                pl.BlockSpec((1, Op), lambda i: (0, 0)),             # fc b
                pl.BlockSpec((1, Hp), lambda i: (0, 0)),             # h0
                pl.BlockSpec((1, Hp), lambda i: (0, 0)),             # c0
            ],
            out_specs=pl.BlockSpec((Bp, Op), lambda i: (0, 0)),
            scratch_shapes=[pltpu.VMEM((Bp, Hp), jnp.float32),       # h state
                            pltpu.VMEM((Bp, Hp), jnp.float32)],      # c state
        ),
        compiler_params=pltpu.CompilerParams(
            dimension_semantics=("arbitrary",)),                     # sequential
    )(gates_x, whh_p, fcw_p, fcb_p, h0_p, c0_p)

    out = out_p[:B, :O]
    if binary:
        out = jax.nn.sigmoid(out)
    return out


# --------------------------------------------------------------------------
# Pure-JAX reference (mirrors the kernel's bf16-weight / f32-accumulate math)
# --------------------------------------------------------------------------
def lstm_reference(x, params, binary=False):
    B, T, F = x.shape
    H = params["w_hh"].shape[0]
    bf = jnp.bfloat16
    w_ih = params["w_ih"].astype(bf)
    w_hh = params["w_hh"].astype(bf)
    fc_w = params["fc_w"].astype(bf)
    bias = (params["b_ih"] + params["b_hh"]).astype(jnp.float32)
    h = jnp.broadcast_to(params["h0"].reshape(1, H), (B, H)).astype(jnp.float32)
    c = jnp.broadcast_to(params["c0"].reshape(1, H), (B, H)).astype(jnp.float32)
    xb = x.astype(bf)
    for t in range(T):
        gates = (jnp.dot(xb[:, t, :], w_ih, preferred_element_type=jnp.float32)
                 + jnp.dot(h.astype(bf), w_hh, preferred_element_type=jnp.float32)
                 + bias)
        i = jax.nn.sigmoid(gates[:, 0 * H:1 * H])
        f = jax.nn.sigmoid(gates[:, 1 * H:2 * H])
        g = jnp.tanh(gates[:, 2 * H:3 * H])
        o = jax.nn.sigmoid(gates[:, 3 * H:4 * H])
        c = f * c + i * g
        h = o * jnp.tanh(c)
    out = (jnp.dot(h.astype(bf), fc_w, preferred_element_type=jnp.float32)
           + params["fc_b"])
    if binary:
        out = jax.nn.sigmoid(out)
    return out


def init_params(key, input_size, hidden_size, output_size):
    ks = jax.random.split(key, 6)
    k = 1.0 / jnp.sqrt(hidden_size)
    # stored pre-transposed: (in, 4H) and (H, O)
    return {
        "w_ih": jax.random.uniform(ks[0], (input_size, 4 * hidden_size),
                                   jnp.float32, -k, k),
        "w_hh": jax.random.uniform(ks[1], (hidden_size, 4 * hidden_size),
                                   jnp.float32, -k, k),
        "b_ih": jax.random.uniform(ks[2], (4 * hidden_size,), jnp.float32, -k, k),
        "b_hh": jax.random.uniform(ks[3], (4 * hidden_size,), jnp.float32, -k, k),
        "fc_w": jax.random.uniform(ks[4], (hidden_size, output_size),
                                   jnp.float32, -k, k),
        "fc_b": jax.random.uniform(ks[5], (output_size,), jnp.float32, -k, k),
        # h0 / c0 are nn.Parameters initialized to zeros in the module
        "h0": jnp.zeros((1, 1, hidden_size), jnp.float32),
        "c0": jnp.zeros((1, 1, hidden_size), jnp.float32),
    }


if __name__ == "__main__":
    B, T, F, H, O = 2, 8, 16, 30, 8        # hidden_size = 30, as in the module
    key = jax.random.PRNGKey(0)
    kx, kp = jax.random.split(key)
    x = jax.random.normal(kx, (B, T, F), jnp.float32)
    params = init_params(kp, F, H, O)

    fwd = jax.jit(lstm_forward, static_argnames=("binary", "time_chunk"))
    out = fwd(x, params, binary=False)
    out = jax.block_until_ready(out)

    ref = lstm_reference(x, params, binary=False)
    assert out.shape == (B, O)
    assert jnp.allclose(out, ref, atol=2e-3, rtol=2e-3), (
        f"mismatch vs reference, max abs err = {jnp.max(jnp.abs(out - ref))}")
    print("KERNEL_OK")
</pallas_src>

<mosaic_0001>
module attributes {stable_mosaic.version = 11 : i64} {
  func.func @_input_proj_kernel(%arg0: i32, %arg1: memref<64x128xbf16, #tpu.memory_space<vmem>>, %arg2: memref<128x512xbf16, #tpu.memory_space<vmem>>, %arg3: memref<1x512xf32, #tpu.memory_space<vmem>>, %arg4: memref<64x512xf32, #tpu.memory_space<vmem>>) attributes {dimension_semantics = [#tpu.dimension_semantics<parallel>], iteration_bounds = array<i64: 1>, scalar_prefetch = 0 : i64, scratch_operands = 0 : i64, tpu.core_type = #tpu.core_type<tc>, window_params = [{transform_indices = @transform_0, window_bounds = array<i64: 64, 128>}, {pipeline_mode = #tpu.pipeline_mode<synchronous>, transform_indices = @transform_1, window_bounds = array<i64: 128, 512>}, {pipeline_mode = #tpu.pipeline_mode<synchronous>, transform_indices = @transform_2, window_bounds = array<i64: 1, 512>}, {transform_indices = @transform_3, window_bounds = array<i64: 64, 512>}]} {
    %c0 = arith.constant 0 : index
    %c0_0 = arith.constant 0 : index
    %0 = vector.load %arg1[%c0, %c0_0] : memref<64x128xbf16, #tpu.memory_space<vmem>>, vector<64x128xbf16>
    %c0_1 = arith.constant 0 : index
    %c0_2 = arith.constant 0 : index
    %1 = vector.load %arg2[%c0_1, %c0_2] : memref<128x512xbf16, #tpu.memory_space<vmem>>, vector<128x512xbf16>
    %cst = arith.constant dense<0.000000e+00> : vector<64x512xf32>
    %2 = tpu.matmul %0, %1, %cst {dimension_numbers = #tpu.dot_dimension_numbers<[1], [0], [0], [1], [0, 0, 1, 1], [], []>} : vector<64x128xbf16>, vector<128x512xbf16>, vector<64x512xf32> -> vector<64x512xf32>
    %c0_3 = arith.constant 0 : index
    %c0_4 = arith.constant 0 : index
    %3 = vector.load %arg3[%c0_3, %c0_4] : memref<1x512xf32, #tpu.memory_space<vmem>>, vector<1x512xf32>
    %4 = vector.broadcast %3 : vector<1x512xf32> to vector<64x512xf32>
    %5 = arith.addf %2, %4 : vector<64x512xf32>
    %c0_5 = arith.constant 0 : index
    %c0_6 = arith.constant 0 : index
    %6 = vector.load %arg4[%c0_5, %c0_6] : memref<64x512xf32, #tpu.memory_space<vmem>>, vector<64x512xf32>
    tpu.vector_store %arg4[%c0_5, %c0_6], %5 {strides = array<i32>} : memref<64x512xf32, #tpu.memory_space<vmem>>, vector<64x512xf32>,
    return
  }
  func.func @transform_0(%arg0: i32) -> (i32, i32) {
    %c0_i32 = arith.constant 0 : i32
    %c0_i32_0 = arith.constant 0 : i32
    return %arg0, %c0_i32 : i32, i32
  }
  func.func @transform_1(%arg0: i32) -> (i32, i32) {
    %c0_i32 = arith.constant 0 : i32
    %c0_i32_0 = arith.constant 0 : i32
    %c0_i32_1 = arith.constant 0 : i32
    return %c0_i32, %c0_i32_0 : i32, i32
  }
  func.func @transform_2(%arg0: i32) -> (i32, i32) {
    %c0_i32 = arith.constant 0 : i32
    %c0_i32_0 = arith.constant 0 : i32
    %c0_i32_1 = arith.constant 0 : i32
    return %c0_i32, %c0_i32_0 : i32, i32
  }
  func.func @transform_3(%arg0: i32) -> (i32, i32) {
    %c0_i32 = arith.constant 0 : i32
    %c0_i32_0 = arith.constant 0 : i32
    return %arg0, %c0_i32 : i32, i32
  }
}

module attributes {stable_mosaic.version = 11 : i64} {
  func.func @_lstm_recurrent_kernel(%arg0: i32, %arg1: memref<64x512xf32, #tpu.memory_space<vmem>>, %arg2: memref<128x512xbf16, #tpu.memory_space<vmem>>, %arg3: memref<128x128xbf16, #tpu.memory_space<vmem>>, %arg4: memref<1x128xf32, #tpu.memory_space<vmem>>, %arg5: memref<1x128xf32, #tpu.memory_space<vmem>>, %arg6: memref<1x128xf32, #tpu.memory_space<vmem>>, %arg7: memref<8x128xf32, #tpu.memory_space<vmem>>, %arg8: memref<8x128xf32, #tpu.memory_space<vmem>>, %arg9: memref<8x128xf32, #tpu.memory_space<vmem>>) attributes {dimension_semantics = [#tpu.dimension_semantics<arbitrary>], iteration_bounds = array<i64: 1>, scalar_prefetch = 0 : i64, scratch_operands = 2 : i64, tpu.core_type = #tpu.core_type<tc>, window_params = [{transform_indices = @transform_0, window_bounds = array<i64: 64, 512>}, {pipeline_mode = #tpu.pipeline_mode<synchronous>, transform_indices = @transform_1, window_bounds = array<i64: 128, 512>}, {pipeline_mode = #tpu.pipeline_mode<synchronous>, transform_indices = @transform_2, window_bounds = array<i64: 128, 128>}, {pipeline_mode = #tpu.pipeline_mode<synchronous>, transform_indices = @transform_3, window_bounds = array<i64: 1, 128>}, {pipeline_mode = #tpu.pipeline_mode<synchronous>, transform_indices = @transform_4, window_bounds = array<i64: 1, 128>}, {pipeline_mode = #tpu.pipeline_mode<synchronous>, transform_indices = @transform_5, window_bounds = array<i64: 1, 128>}, {pipeline_mode = #tpu.pipeline_mode<synchronous>, transform_indices = @transform_6, window_bounds = array<i64: 8, 128>}]} {
    %c0_i32 = arith.constant 0 : i32
    %0 = arith.cmpi eq, %arg0, %c0_i32 : i32
    %1 = arith.extui %0 : i1 to i32
    %c0_i32_0 = arith.constant 0 : i32
    %2 = arith.cmpi ne, %1, %c0_i32_0 : i32
    scf.if %2 {
      %c0_60 = arith.constant 0 : index
      %c0_61 = arith.constant 0 : index
      %267 = vector.load %arg5[%c0_60, %c0_61] : memref<1x128xf32, #tpu.memory_space<vmem>>, vector<1x128xf32>
      %268 = vector.shape_cast %267 : vector<1x128xf32> to vector<1x128xf32>
      %269 = vector.broadcast %268 : vector<1x128xf32> to vector<8x128xf32>
      %c0_62 = arith.constant 0 : index
      %c0_63 = arith.constant 0 : index
      %270 = vector.load %arg8[%c0_62, %c0_63] : memref<8x128xf32, #tpu.memory_space<vmem>>, vector<8x128xf32>
      tpu.vector_store %arg8[%c0_62, %c0_63], %269 {strides = array<i32>} : memref<8x128xf32, #tpu.memory_space<vmem>>, vector<8x128xf32>,
      %c0_64 = arith.constant 0 : index
      %c0_65 = arith.constant 0 : index
      %271 = vector.load %arg6[%c0_64, %c0_65] : memref<1x128xf32, #tpu.memory_space<vmem>>, vector<1x128xf32>
      %272 = vector.shape_cast %271 : vector<1x128xf32> to vector<1x128xf32>
      %273 = vector.broadcast %272 : vector<1x128xf32> to vector<8x128xf32>
      %c0_66 = arith.constant 0 : index
      %c0_67 = arith.constant 0 : index
      %274 = vector.load %arg9[%c0_66, %c0_67] : memref<8x128xf32, #tpu.memory_space<vmem>>, vector<8x128xf32>
      tpu.vector_store %arg9[%c0_66, %c0_67], %273 {strides = array<i32>} : memref<8x128xf32, #tpu.memory_space<vmem>>, vector<8x128xf32>,
    } else {
    }
    %c0 = arith.constant 0 : index
    %c0_1 = arith.constant 0 : index
    %3 = vector.load %arg2[%c0, %c0_1] : memref<128x512xbf16, #tpu.memory_space<vmem>>, vector<128x512xbf16>
    %c0_2 = arith.constant 0 : index
    %c0_3 = arith.constant 0 : index
    %4 = vector.load %arg8[%c0_2, %c0_3] : memref<8x128xf32, #tpu.memory_space<vmem>>, vector<8x128xf32>
    %c0_4 = arith.constant 0 : index
    %c0_5 = arith.constant 0 : index
    %5 = vector.load %arg9[%c0_4, %c0_5] : memref<8x128xf32, #tpu.memory_space<vmem>>, vector<8x128xf32>
    %c0_i32_6 = arith.constant 0 : i32
    %c8_i32 = arith.constant 8 : i32
    %6 = arith.muli %c0_i32_6, %c8_i32 : i32
    %7 = tpu.assume_multiple %6, 8 : i32
    %8 = arith.index_cast %7 : i32 to index
    %c0_7 = arith.constant 0 : index
    %9 = vector.load %arg1[%8, %c0_7] : memref<64x512xf32, #tpu.memory_space<vmem>>, vector<8x512xf32>
    %10 = arith.truncf %4 : vector<8x128xf32> to vector<8x128xbf16>
    %cst = arith.constant dense<0.000000e+00> : vector<8x512xf32>
    %11 = tpu.matmul %10, %3, %cst {dimension_numbers = #tpu.dot_dimension_numbers<[1], [0], [0], [1], [0, 0, 1, 1], [], []>} : vector<8x128xbf16>, vector<128x512xbf16>, vector<8x512xf32> -> vector<8x512xf32>
    %12 = arith.addf %9, %11 : vector<8x512xf32>
    %13 = vector.extract_strided_slice %12 {offsets = [0, 0], sizes = [8, 128], strides = [1, 1]} : vector<8x512xf32> to vector<8x128xf32>
    %14 = arith.negf %13 : vector<8x128xf32>
    %15 = math.exp %14 : vector<8x128xf32>
    %cst_8 = arith.constant 1.000000e+00 : f32
    %16 = vector.broadcast %cst_8 : f32 to vector<8x128xf32>
    %17 = arith.addf %16, %15 : vector<8x128xf32>
    %18 = arith.divf %16, %17 : vector<8x128xf32>
    %19 = vector.extract_strided_slice %12 {offsets = [0, 128], sizes = [8, 128], strides = [1, 1]} : vector<8x512xf32> to vector<8x128xf32>
    %20 = arith.negf %19 : vector<8x128xf32>
    %21 = math.exp %20 : vector<8x128xf32>
    %cst_9 = arith.constant 1.000000e+00 : f32
    %22 = vector.broadcast %cst_9 : f32 to vector<8x128xf32>
    %23 = arith.addf %22, %21 : vector<8x128xf32>
    %24 = arith.divf %22, %23 : vector<8x128xf32>
    %25 = vector.extract_strided_slice %12 {offsets = [0, 256], sizes = [8, 128], strides = [1, 1]} : vector<8x512xf32> to vector<8x128xf32>
    %26 = math.tanh %25 : vector<8x128xf32>
    %27 = vector.extract_strided_slice %12 {offsets = [0, 384], sizes = [8, 128], strides = [1, 1]} : vector<8x512xf32> to vector<8x128xf32>
    %28 = arith.negf %27 : vector<8x128xf32>
    %29 = math.exp %28 : vector<8x128xf32>
    %cst_10 = arith.constant 1.000000e+00 : f32
    %30 = vector.broadcast %cst_10 : f32 to vector<8x128xf32>
    %31 = arith.addf %30, %29 : vector<8x128xf32>
    %32 = arith.divf %30, %31 : vector<8x128xf32>
    %33 = arith.mulf %24, %5 : vector<8x128xf32>
    %34 = arith.mulf %18, %26 : vector<8x128xf32>
    %35 = arith.addf %33, %34 : vector<8x128xf32>
    %36 = math.tanh %35 : vector<8x128xf32>
    %37 = arith.mulf %32, %36 : vector<8x128xf32>
    %c1_i32 = arith.constant 1 : i32
    %c8_i32_11 = arith.constant 8 : i32
    %38 = arith.muli %c1_i32, %c8_i32_11 : i32
    %39 = tpu.assume_multiple %38, 8 : i32
    %40 = arith.index_cast %39 : i32 to index
    %c0_12 = arith.constant 0 : index
    %41 = vector.load %arg1[%40, %c0_12] : memref<64x512xf32, #tpu.memory_space<vmem>>, vector<8x512xf32>
    %42 = arith.truncf %37 : vector<8x128xf32> to vector<8x128xbf16>
    %cst_13 = arith.constant dense<0.000000e+00> : vector<8x512xf32>
    %43 = tpu.matmul %42, %3, %cst_13 {dimension_numbers = #tpu.dot_dimension_numbers<[1], [0], [0], [1], [0, 0, 1, 1], [], []>} : vector<8x128xbf16>, vector<128x512xbf16>, vector<8x512xf32> -> vector<8x512xf32>
    %44 = arith.addf %41, %43 : vector<8x512xf32>
    %45 = vector.extract_strided_slice %44 {offsets = [0, 0], sizes = [8, 128], strides = [1, 1]} : vector<8x512xf32> to vector<8x128xf32>
    %46 = arith.negf %45 : vector<8x128xf32>
    %47 = math.exp %46 : vector<8x128xf32>
    %cst_14 = arith.constant 1.000000e+00 : f32
    %48 = vector.broadcast %cst_14 : f32 to vector<8x128xf32>
    %49 = arith.addf %48, %47 : vector<8x128xf32>
    %50 = arith.divf %48, %49 : vector<8x128xf32>
    %51 = vector.extract_strided_slice %44 {offsets = [0, 128], sizes = [8, 128], strides = [1, 1]} : vector<8x512xf32> to vector<8x128xf32>
    %52 = arith.negf %51 : vector<8x128xf32>
    %53 = math.exp %52 : vector<8x128xf32>
    %cst_15 = arith.constant 1.000000e+00 : f32
    %54 = vector.broadcast %cst_15 : f32 to vector<8x128xf32>
    %55 = arith.addf %54, %53 : vector<8x128xf32>
    %56 = arith.divf %54, %55 : vector<8x128xf32>
    %57 = vector.extract_strided_slice %44 {offsets = [0, 256], sizes = [8, 128], strides = [1, 1]} : vector<8x512xf32> to vector<8x128xf32>
    %58 = math.tanh %57 : vector<8x128xf32>
    %59 = vector.extract_strided_slice %44 {offsets = [0, 384], sizes = [8, 128], strides = [1, 1]} : vector<8x512xf32> to vector<8x128xf32>
    %60 = arith.negf %59 : vector<8x128xf32>
    %61 = math.exp %60 : vector<8x128xf32>
    %cst_16 = arith.constant 1.000000e+00 : f32
    %62 = vector.broadcast %cst_16 : f32 to vector<8x128xf32>
    %63 = arith.addf %62, %61 : vector<8x128xf32>
    %64 = arith.divf %62, %63 : vector<8x128xf32>
    %65 = arith.mulf %56, %35 : vector<8x128xf32>
    %66 = arith.mulf %50, %58 : vector<8x128xf32>
    %67 = arith.addf %65, %66 : vector<8x128xf32>
    %68 = math.tanh %67 : vector<8x128xf32>
    %69 = arith.mulf %64, %68 : vector<8x128xf32>
    %c2_i32 = arith.constant 2 : i32
    %c8_i32_17 = arith.constant 8 : i32
    %70 = arith.muli %c2_i32, %c8_i32_17 : i32
    %71 = tpu.assume_multiple %70, 8 : i32
    %72 = arith.index_cast %71 : i32 to index
    %c0_18 = arith.constant 0 : index
    %73 = vector.load %arg1[%72, %c0_18] : memref<64x512xf32, #tpu.memory_space<vmem>>, vector<8x512xf32>
    %74 = arith.truncf %69 : vector<8x128xf32> to vector<8x128xbf16>
    %cst_19 = arith.constant dense<0.000000e+00> : vector<8x512xf32>
    %75 = tpu.matmul %74, %3, %cst_19 {dimension_numbers = #tpu.dot_dimension_numbers<[1], [0], [0], [1], [0, 0, 1, 1], [], []>} : vector<8x128xbf16>, vector<128x512xbf16>, vector<8x512xf32> -> vector<8x512xf32>
    %76 = arith.addf %73, %75 : vector<8x512xf32>
    %77 = vector.extract_strided_slice %76 {offsets = [0, 0], sizes = [8, 128], strides = [1, 1]} : vector<8x512xf32> to vector<8x128xf32>
    %78 = arith.negf %77 : vector<8x128xf32>
    %79 = math.exp %78 : vector<8x128xf32>
    %cst_20 = arith.constant 1.000000e+00 : f32
    %80 = vector.broadcast %cst_20 : f32 to vector<8x128xf32>
    %81 = arith.addf %80, %79 : vector<8x128xf32>
    %82 = arith.divf %80, %81 : vector<8x128xf32>
    %83 = vector.extract_strided_slice %76 {offsets = [0, 128], sizes = [8, 128], strides = [1, 1]} : vector<8x512xf32> to vector<8x128xf32>
    %84 = arith.negf %83 : vector<8x128xf32>
    %85 = math.exp %84 : vector<8x128xf32>
    %cst_21 = arith.constant 1.000000e+00 : f32
    %86 = vector.broadcast %cst_21 : f32 to vector<8x128xf32>
    %87 = arith.addf %86, %85 : vector<8x128xf32>
    %88 = arith.divf %86, %87 : vector<8x128xf32>
    %89 = vector.extract_strided_slice %76 {offsets = [0, 256], sizes = [8, 128], strides = [1, 1]} : vector<8x512xf32> to vector<8x128xf32>
    %90 = math.tanh %89 : vector<8x128xf32>
    %91 = vector.extract_strided_slice %76 {offsets = [0, 384], sizes = [8, 128], strides = [1, 1]} : vector<8x512xf32> to vector<8x128xf32>
    %92 = arith.negf %91 : vector<8x128xf32>
    %93 = math.exp %92 : vector<8x128xf32>
    %cst_22 = arith.constant 1.000000e+00 : f32
    %94 = vector.broadcast %cst_22 : f32 to vector<8x128xf32>
    %95 = arith.addf %94, %93 : vector<8x128xf32>
    %96 = arith.divf %94, %95 : vector<8x128xf32>
    %97 = arith.mulf %88, %67 : vector<8x128xf32>
    %98 = arith.mulf %82, %90 : vector<8x128xf32>
    %99 = arith.addf %97, %98 : vector<8x128xf32>
    %100 = math.tanh %99 : vector<8x128xf32>
    %101 = arith.mulf %96, %100 : vector<8x128xf32>
    %c3_i32 = arith.constant 3 : i32
    %c8_i32_23 = arith.constant 8 : i32
    %102 = arith.muli %c3_i32, %c8_i32_23 : i32
    %103 = tpu.assume_multiple %102, 8 : i32
    %104 = arith.index_cast %103 : i32 to index
    %c0_24 = arith.constant 0 : index
    %105 = vector.load %arg1[%104, %c0_24] : memref<64x512xf32, #tpu.memory_space<vmem>>, vector<8x512xf32>
    %106 = arith.truncf %101 : vector<8x128xf32> to vector<8x128xbf16>
    %cst_25 = arith.constant dense<0.000000e+00> : vector<8x512xf32>
    %107 = tpu.matmul %106, %3, %cst_25 {dimension_numbers = #tpu.dot_dimension_numbers<[1], [0], [0], [1], [0, 0, 1, 1], [], []>} : vector<8x128xbf16>, vector<128x512xbf16>, vector<8x512xf32> -> vector<8x512xf32>
    %108 = arith.addf %105, %107 : vector<8x512xf32>
    %109 = vector.extract_strided_slice %108 {offsets = [0, 0], sizes = [8, 128], strides = [1, 1]} : vector<8x512xf32> to vector<8x128xf32>
    %110 = arith.negf %109 : vector<8x128xf32>
    %111 = math.exp %110 : vector<8x128xf32>
    %cst_26 = arith.constant 1.000000e+00 : f32
    %112 = vector.broadcast %cst_26 : f32 to vector<8x128xf32>
    %113 = arith.addf %112, %111 : vector<8x128xf32>
    %114 = arith.divf %112, %113 : vector<8x128xf32>
    %115 = vector.extract_strided_slice %108 {offsets = [0, 128], sizes = [8, 128], strides = [1, 1]} : vector<8x512xf32> to vector<8x128xf32>
    %116 = arith.negf %115 : vector<8x128xf32>
    %117 = math.exp %116 : vector<8x128xf32>
    %cst_27 = arith.constant 1.000000e+00 : f32
    %118 = vector.broadcast %cst_27 : f32 to vector<8x128xf32>
    %119 = arith.addf %118, %117 : vector<8x128xf32>
    %120 = arith.divf %118, %119 : vector<8x128xf32>
    %121 = vector.extract_strided_slice %108 {offsets = [0, 256], sizes = [8, 128], strides = [1, 1]} : vector<8x512xf32> to vector<8x128xf32>
    %122 = math.tanh %121 : vector<8x128xf32>
    %123 = vector.extract_strided_slice %108 {offsets = [0, 384], sizes = [8, 128], strides = [1, 1]} : vector<8x512xf32> to vector<8x128xf32>
    %124 = arith.negf %123 : vector<8x128xf32>
    %125 = math.exp %124 : vector<8x128xf32>
    %cst_28 = arith.constant 1.000000e+00 : f32
    %126 = vector.broadcast %cst_28 : f32 to vector<8x128xf32>
    %127 = arith.addf %126, %125 : vector<8x128xf32>
    %128 = arith.divf %126, %127 : vector<8x128xf32>
    %129 = arith.mulf %120, %99 : vector<8x128xf32>
    %130 = arith.mulf %114, %122 : vector<8x128xf32>
    %131 = arith.addf %129, %130 : vector<8x128xf32>
    %132 = math.tanh %131 : vector<8x128xf32>
    %133 = arith.mulf %128, %132 : vector<8x128xf32>
    %c4_i32 = arith.constant 4 : i32
    %c8_i32_29 = arith.constant 8 : i32
    %134 = arith.muli %c4_i32, %c8_i32_29 : i32
    %135 = tpu.assume_multiple %134, 8 : i32
    %136 = arith.index_cast %135 : i32 to index
    %c0_30 = arith.constant 0 : index
    %137 = vector.load %arg1[%136, %c0_30] : memref<64x512xf32, #tpu.memory_space<vmem>>, vector<8x512xf32>
    %138 = arith.truncf %133 : vector<8x128xf32> to vector<8x128xbf16>
    %cst_31 = arith.constant dense<0.000000e+00> : vector<8x512xf32>
    %139 = tpu.matmul %138, %3, %cst_31 {dimension_numbers = #tpu.dot_dimension_numbers<[1], [0], [0], [1], [0, 0, 1, 1], [], []>} : vector<8x128xbf16>, vector<128x512xbf16>, vector<8x512xf32> -> vector<8x512xf32>
    %140 = arith.addf %137, %139 : vector<8x512xf32>
    %141 = vector.extract_strided_slice %140 {offsets = [0, 0], sizes = [8, 128], strides = [1, 1]} : vector<8x512xf32> to vector<8x128xf32>
    %142 = arith.negf %141 : vector<8x128xf32>
    %143 = math.exp %142 : vector<8x128xf32>
    %cst_32 = arith.constant 1.000000e+00 : f32
    %144 = vector.broadcast %cst_32 : f32 to vector<8x128xf32>
    %145 = arith.addf %144, %143 : vector<8x128xf32>
    %146 = arith.divf %144, %145 : vector<8x128xf32>
    %147 = vector.extract_strided_slice %140 {offsets = [0, 128], sizes = [8, 128], strides = [1, 1]} : vector<8x512xf32> to vector<8x128xf32>
    %148 = arith.negf %147 : vector<8x128xf32>
    %149 = math.exp %148 : vector<8x128xf32>
    %cst_33 = arith.constant 1.000000e+00 : f32
    %150 = vector.broadcast %cst_33 : f32 to vector<8x128xf32>
    %151 = arith.addf %150, %149 : vector<8x128xf32>
    %152 = arith.divf %150, %151 : vector<8x128xf32>
    %153 = vector.extract_strided_slice %140 {offsets = [0, 256], sizes = [8, 128], strides = [1, 1]} : vector<8x512xf32> to vector<8x128xf32>
    %154 = math.tanh %153 : vector<8x128xf32>
    %155 = vector.extract_strided_slice %140 {offsets = [0, 384], sizes = [8, 128], strides = [1, 1]} : vector<8x512xf32> to vector<8x128xf32>
    %156 = arith.negf %155 : vector<8x128xf32>
    %157 = math.exp %156 : vector<8x128xf32>
    %cst_34 = arith.constant 1.000000e+00 : f32
    %158 = vector.broadcast %cst_34 : f32 to vector<8x128xf32>
    %159 = arith.addf %158, %157 : vector<8x128xf32>
    %160 = arith.divf %158, %159 : vector<8x128xf32>
    %161 = arith.mulf %152, %131 : vector<8x128xf32>
    %162 = arith.mulf %146, %154 : vector<8x128xf32>
    %163 = arith.addf %161, %162 : vector<8x128xf32>
    %164 = math.tanh %163 : vector<8x128xf32>
    %165 = arith.mulf %160, %164 : vector<8x128xf32>
    %c5_i32 = arith.constant 5 : i32
    %c8_i32_35 = arith.constant 8 : i32
    %166 = arith.muli %c5_i32, %c8_i32_35 : i32
    %167 = tpu.assume_multiple %166, 8 : i32
    %168 = arith.index_cast %167 : i32 to index
    %c0_36 = arith.constant 0 : index
    %169 = vector.load %arg1[%168, %c0_36] : memref<64x512xf32, #tpu.memory_space<vmem>>, vector<8x512xf32>
    %170 = arith.truncf %165 : vector<8x128xf32> to vector<8x128xbf16>
    %cst_37 = arith.constant dense<0.000000e+00> : vector<8x512xf32>
    %171 = tpu.matmul %170, %3, %cst_37 {dimension_numbers = #tpu.dot_dimension_numbers<[1], [0], [0], [1], [0, 0, 1, 1], [], []>} : vector<8x128xbf16>, vector<128x512xbf16>, vector<8x512xf32> -> vector<8x512xf32>
    %172 = arith.addf %169, %171 : vector<8x512xf32>
    %173 = vector.extract_strided_slice %172 {offsets = [0, 0], sizes = [8, 128], strides = [1, 1]} : vector<8x512xf32> to vector<8x128xf32>
    %174 = arith.negf %173 : vector<8x128xf32>
    %175 = math.exp %174 : vector<8x128xf32>
    %cst_38 = arith.constant 1.000000e+00 : f32
    %176 = vector.broadcast %cst_38 : f32 to vector<8x128xf32>
    %177 = arith.addf %176, %175 : vector<8x128xf32>
    %178 = arith.divf %176, %177 : vector<8x128xf32>
    %179 = vector.extract_strided_slice %172 {offsets = [0, 128], sizes = [8, 128], strides = [1, 1]} : vector<8x512xf32> to vector<8x128xf32>
    %180 = arith.negf %179 : vector<8x128xf32>
    %181 = math.exp %180 : vector<8x128xf32>
    %cst_39 = arith.constant 1.000000e+00 : f32
    %182 = vector.broadcast %cst_39 : f32 to vector<8x128xf32>
    %183 = arith.addf %182, %181 : vector<8x128xf32>
    %184 = arith.divf %182, %183 : vector<8x128xf32>
    %185 = vector.extract_strided_slice %172 {offsets = [0, 256], sizes = [8, 128], strides = [1, 1]} : vector<8x512xf32> to vector<8x128xf32>
    %186 = math.tanh %185 : vector<8x128xf32>
    %187 = vector.extract_strided_slice %172 {offsets = [0, 384], sizes = [8, 128], strides = [1, 1]} : vector<8x512xf32> to vector<8x128xf32>
    %188 = arith.negf %187 : vector<8x128xf32>
    %189 = math.exp %188 : vector<8x128xf32>
    %cst_40 = arith.constant 1.000000e+00 : f32
    %190 = vector.broadcast %cst_40 : f32 to vector<8x128xf32>
    %191 = arith.addf %190, %189 : vector<8x128xf32>
    %192 = arith.divf %190, %191 : vector<8x128xf32>
    %193 = arith.mulf %184, %163 : vector<8x128xf32>
    %194 = arith.mulf %178, %186 : vector<8x128xf32>
    %195 = arith.addf %193, %194 : vector<8x128xf32>
    %196 = math.tanh %195 : vector<8x128xf32>
    %197 = arith.mulf %192, %196 : vector<8x128xf32>
    %c6_i32 = arith.constant 6 : i32
    %c8_i32_41 = arith.constant 8 : i32
    %198 = arith.muli %c6_i32, %c8_i32_41 : i32
    %199 = tpu.assume_multiple %198, 8 : i32
    %200 = arith.index_cast %199 : i32 to index
    %c0_42 = arith.constant 0 : index
    %201 = vector.load %arg1[%200, %c0_42] : memref<64x512xf32, #tpu.memory_space<vmem>>, vector<8x512xf32>
    %202 = arith.truncf %197 : vector<8x128xf32> to vector<8x128xbf16>
    %cst_43 = arith.constant dense<0.000000e+00> : vector<8x512xf32>
    %203 = tpu.matmul %202, %3, %cst_43 {dimension_numbers = #tpu.dot_dimension_numbers<[1], [0], [0], [1], [0, 0, 1, 1], [], []>} : vector<8x128xbf16>, vector<128x512xbf16>, vector<8x512xf32> -> vector<8x512xf32>
    %204 = arith.addf %201, %203 : vector<8x512xf32>
    %205 = vector.extract_strided_slice %204 {offsets = [0, 0], sizes = [8, 128], strides = [1, 1]} : vector<8x512xf32> to vector<8x128xf32>
    %206 = arith.negf %205 : vector<8x128xf32>
    %207 = math.exp %206 : vector<8x128xf32>
    %cst_44 = arith.constant 1.000000e+00 : f32
    %208 = vector.broadcast %cst_44 : f32 to vector<8x128xf32>
    %209 = arith.addf %208, %207 : vector<8x128xf32>
    %210 = arith.divf %208, %209 : vector<8x128xf32>
    %211 = vector.extract_strided_slice %204 {offsets = [0, 128], sizes = [8, 128], strides = [1, 1]} : vector<8x512xf32> to vector<8x128xf32>
    %212 = arith.negf %211 : vector<8x128xf32>
    %213 = math.exp %212 : vector<8x128xf32>
    %cst_45 = arith.constant 1.000000e+00 : f32
    %214 = vector.broadcast %cst_45 : f32 to vector<8x128xf32>
    %215 = arith.addf %214, %213 : vector<8x128xf32>
    %216 = arith.divf %214, %215 : vector<8x128xf32>
    %217 = vector.extract_strided_slice %204 {offsets = [0, 256], sizes = [8, 128], strides = [1, 1]} : vector<8x512xf32> to vector<8x128xf32>
    %218 = math.tanh %217 : vector<8x128xf32>
    %219 = vector.extract_strided_slice %204 {offsets = [0, 384], sizes = [8, 128], strides = [1, 1]} : vector<8x512xf32> to vector<8x128xf32>
    %220 = arith.negf %219 : vector<8x128xf32>
    %221 = math.exp %220 : vector<8x128xf32>
    %cst_46 = arith.constant 1.000000e+00 : f32
    %222 = vector.broadcast %cst_46 : f32 to vector<8x128xf32>
    %223 = arith.addf %222, %221 : vector<8x128xf32>
    %224 = arith.divf %222, %223 : vector<8x128xf32>
    %225 = arith.mulf %216, %195 : vector<8x128xf32>
    %226 = arith.mulf %210, %218 : vector<8x128xf32>
    %227 = arith.addf %225, %226 : vector<8x128xf32>
    %228 = math.tanh %227 : vector<8x128xf32>
    %229 = arith.mulf %224, %228 : vector<8x128xf32>
    %c7_i32 = arith.constant 7 : i32
    %c8_i32_47 = arith.constant 8 : i32
    %230 = arith.muli %c7_i32, %c8_i32_47 : i32
    %231 = tpu.assume_multiple %230, 8 : i32
    %232 = arith.index_cast %231 : i32 to index
    %c0_48 = arith.constant 0 : index
    %233 = vector.load %arg1[%232, %c0_48] : memref<64x512xf32, #tpu.memory_space<vmem>>, vector<8x512xf32>
    %234 = arith.truncf %229 : vector<8x128xf32> to vector<8x128xbf16>
    %cst_49 = arith.constant dense<0.000000e+00> : vector<8x512xf32>
    %235 = tpu.matmul %234, %3, %cst_49 {dimension_numbers = #tpu.dot_dimension_numbers<[1], [0], [0], [1], [0, 0, 1, 1], [], []>} : vector<8x128xbf16>, vector<128x512xbf16>, vector<8x512xf32> -> vector<8x512xf32>
    %236 = arith.addf %233, %235 : vector<8x512xf32>
    %237 = vector.extract_strided_slice %236 {offsets = [0, 0], sizes = [8, 128], strides = [1, 1]} : vector<8x512xf32> to vector<8x128xf32>
    %238 = arith.negf %237 : vector<8x128xf32>
    %239 = math.exp %238 : vector<8x128xf32>
    %cst_50 = arith.constant 1.000000e+00 : f32
    %240 = vector.broadcast %cst_50 : f32 to vector<8x128xf32>
    %241 = arith.addf %240, %239 : vector<8x128xf32>
    %242 = arith.divf %240, %241 : vector<8x128xf32>
    %243 = vector.extract_strided_slice %236 {offsets = [0, 128], sizes = [8, 128], strides = [1, 1]} : vector<8x512xf32> to vector<8x128xf32>
    %244 = arith.negf %243 : vector<8x128xf32>
    %245 = math.exp %244 : vector<8x128xf32>
    %cst_51 = arith.constant 1.000000e+00 : f32
    %246 = vector.broadcast %cst_51 : f32 to vector<8x128xf32>
    %247 = arith.addf %246, %245 : vector<8x128xf32>
    %248 = arith.divf %246, %247 : vector<8x128xf32>
    %249 = vector.extract_strided_slice %236 {offsets = [0, 256], sizes = [8, 128], strides = [1, 1]} : vector<8x512xf32> to vector<8x128xf32>
    %250 = math.tanh %249 : vector<8x128xf32>
    %251 = vector.extract_strided_slice %236 {offsets = [0, 384], sizes = [8, 128], strides = [1, 1]} : vector<8x512xf32> to vector<8x128xf32>
    %252 = arith.negf %251 : vector<8x128xf32>
    %253 = math.exp %252 : vector<8x128xf32>
    %cst_52 = arith.constant 1.000000e+00 : f32
    %254 = vector.broadcast %cst_52 : f32 to vector<8x128xf32>
    %255 = arith.addf %254, %253 : vector<8x128xf32>
    %256 = arith.divf %254, %255 : vector<8x128xf32>
    %257 = arith.mulf %248, %227 : vector<8x128xf32>
    %258 = arith.mulf %242, %250 : vector<8x128xf32>
    %259 = arith.addf %257, %258 : vector<8x128xf32>
    %260 = math.tanh %259 : vector<8x128xf32>
    %261 = arith.mulf %256, %260 : vector<8x128xf32>
    %c8_i32_53 = arith.constant 8 : i32
    %c0_54 = arith.constant 0 : index
    %c0_55 = arith.constant 0 : index
    %262 = vector.load %arg8[%c0_54, %c0_55] : memref<8x128xf32, #tpu.memory_space<vmem>>, vector<8x128xf32>
    tpu.vector_store %arg8[%c0_54, %c0_55], %261 {strides = array<i32>} : memref<8x128xf32, #tpu.memory_space<vmem>>, vector<8x128xf32>,
    %c0_56 = arith.constant 0 : index
    %c0_57 = arith.constant 0 : index
    %263 = vector.load %arg9[%c0_56, %c0_57] : memref<8x128xf32, #tpu.memory_space<vmem>>, vector<8x128xf32>
    tpu.vector_store %arg9[%c0_56, %c0_57], %259 {strides = array<i32>} : memref<8x128xf32, #tpu.memory_space<vmem>>, vector<8x128xf32>,
    %c0_i32_58 = arith.constant 0 : i32
    %264 = arith.cmpi eq, %arg0, %c0_i32_58 : i32
    %265 = arith.extui %264 : i1 to i32
    %c0_i32_59 = arith.constant 0 : i32
    %266 = arith.cmpi ne, %265, %c0_i32_59 : i32
    scf.if %266 {
      %267 = arith.truncf %261 : vector<8x128xf32> to vector<8x128xbf16>
      %c0_60 = arith.constant 0 : index
      %c0_61 = arith.constant 0 : index
      %268 = vector.load %arg3[%c0_60, %c0_61] : memref<128x128xbf16, #tpu.memory_space<vmem>>, vector<128x128xbf16>
      %cst_62 = arith.constant dense<0.000000e+00> : vector<8x128xf32>
      %269 = tpu.matmul %267, %268, %cst_62 {dimension_numbers = #tpu.dot_dimension_numbers<[1], [0], [0], [1], [0, 0, 1, 1], [], []>} : vector<8x128xbf16>, vector<128x128xbf16>, vector<8x128xf32> -> vector<8x128xf32>
      %c0_63 = arith.constant 0 : index
      %c0_64 = arith.constant 0 : index
      %270 = vector.load %arg4[%c0_63, %c0_64] : memref<1x128xf32, #tpu.memory_space<vmem>>, vector<1x128xf32>
      %271 = vector.broadcast %270 : vector<1x128xf32> to vector<8x128xf32>
      %272 = arith.addf %269, %271 : vector<8x128xf32>
      %c0_65 = arith.constant 0 : index
      %c0_66 = arith.constant 0 : index
      %273 = vector.load %arg7[%c0_65, %c0_66] : memref<8x128xf32, #tpu.memory_space<vmem>>, vector<8x128xf32>
      tpu.vector_store %arg7[%c0_65, %c0_66], %272 {strides = array<i32>} : memref<8x128xf32, #tpu.memory_space<vmem>>, vector<8x128xf32>,
    } else {
    }
    return
  }
  func.func @transform_0(%arg0: i32) -> (i32, i32) {
    %c0_i32 = arith.constant 0 : i32
    %c0_i32_0 = arith.constant 0 : i32
    return %arg0, %c0_i32 : i32, i32
  }
  func.func @transform_1(%arg0: i32) -> (i32, i32) {
    %c0_i32 = arith.constant 0 : i32
    %c0_i32_0 = arith.constant 0 : i32
    %c0_i32_1 = arith.constant 0 : i32
    return %c0_i32, %c0_i32_0 : i32, i32
  }
  func.func @transform_2(%arg0: i32) -> (i32, i32) {
    %c0_i32 = arith.constant 0 : i32
    %c0_i32_0 = arith.constant 0 : i32
    %c0_i32_1 = arith.constant 0 : i32
    return %c0_i32, %c0_i32_0 : i32, i32
  }
  func.func @transform_3(%arg0: i32) -> (i32, i32) {
    %c0_i32 = arith.constant 0 : i32
    %c0_i32_0 = arith.constant 0 : i32
    %c0_i32_1 = arith.constant 0 : i32
    return %c0_i32, %c0_i32_0 : i32, i32
  }
  func.func @transform_4(%arg0: i32) -> (i32, i32) {
    %c0_i32 = arith.constant 0 : i32
    %c0_i32_0 = arith.constant 0 : i32
    %c0_i32_1 = arith.constant 0 : i32
    return %c0_i32, %c0_i32_0 : i32, i32
  }
  func.func @transform_5(%arg0: i32) -> (i32, i32) {
    %c0_i32 = arith.constant 0 : i32
    %c0_i32_0 = arith.constant 0 : i32
    %c0_i32_1 = arith.constant 0 : i32
    return %c0_i32, %c0_i32_0 : i32, i32
  }
  func.func @transform_6(%arg0: i32) -> (i32, i32) {
    %c0_i32 = arith.constant 0 : i32
    %c0_i32_0 = arith.constant 0 : i32
    %c0_i32_1 = arith.constant 0 : i32
    return %c0_i32, %c0_i32_0 : i32, i32
  }
}

</mosaic_0001>

<bundles_post_ra>
// kernel: lstm_forward.2
= control target key start
LH: loop header
LB: loop body
LE: loop exit
PB: predicated region body
PF: predicated region fallthrough
CT: control target
= control target key end

     0   :  { %v532_v1 = vmov 0   ;;  %v57_v37 = vlaneseq  ;;  %s808_s1 = inlined_call_operand.vmem [shape: bf16[128,512], index: 1, kind: input, shape index: {}]   ;;  %s809_s0 = inlined_call_operand.vmem [shape: bf16[64,128], index: 0, kind: input, shape index: {}]   ;;  %s810_s2 = inlined_call_operand.vmem [shape: f32[1,512], index: 2, kind: input, shape index: {}]   ;;  %s811_s3 = inlined_call_operand.vmem [shape: f32[64,512], index: 3, kind: output, shape index: {}]  }
   0x1   :  { %v480_v0 = vld [vmem:[%s808_s1 + $0x4] ss:$16 sps:$4 sm:$0xff]   ;;  %293 = vmatprep.mubr.bf16.mxu0 %v532_v1  ;;  %366 = vmatprep.mubr.bf16.mxu1 %v532_v1  ;;  %v482_v2 = vld [vmem:[%s808_s1 + $0xc] ss:$16 sps:$4 sm:$0xff]   ;;  %v484_v3 = vld [vmem:[%s808_s1] ss:$16 sps:$4 sm:$0xff]  }
   0x2   :  { %261 = vmatprep.subr.bf16.mxu0 %v480_v0  ;;  %v485_v4 = vld [vmem:[%s808_s1 + $0x8] ss:$16 sps:$4 sm:$0xff]   ;;  %334 = vmatprep.subr.bf16.mxu1 %v482_v2  ;;  %v486_v5 = vld [vmem:[%s808_s1 + $0x24] ss:$16 sps:$4 sm:$0xff]   ;;  %v488_v6 = vld [vmem:[%s808_s1 + $0x2c] ss:$16 sps:$4 sm:$0xff]  }
   0x3   :  { %262 = vmatpush1.bf16.msra.mxu0 %v484_v3  ;;  %335 = vmatpush1.bf16.msra.mxu1 %v485_v4  ;;  %v490_v7 = vld [vmem:[%s808_s1 + $0x20] ss:$16 sps:$4 sm:$0xff]   ;;  %v491_v8 = vld [vmem:[%s808_s1 + $0x28] ss:$16 sps:$4 sm:$0xff]   ;;  %v492_v9 = vld [vmem:[%s808_s1 + $0x44] ss:$16 sps:$4 sm:$0xff]  }
   0x4   :  { %263 = vmatprep.subr.bf16.mxu0 %v486_v5  ;;  %336 = vmatprep.subr.bf16.mxu1 %v488_v6  ;;  %v494_v10 = vld [vmem:[%s808_s1 + $0x4c] ss:$16 sps:$4 sm:$0xff]   ;;  %v496_v11 = vld [vmem:[%s808_s1 + $0x40] ss:$16 sps:$4 sm:$0xff]   ;;  %v497_v12 = vld [vmem:[%s808_s1 + $0x48] ss:$16 sps:$4 sm:$0xff]  }
   0x5   :  { %v498_v13 = vld [vmem:[%s808_s1 + $0x64] ss:$16 sps:$4 sm:$0xff]   ;;  %v500_v14 = vld [vmem:[%s808_s1 + $0x6c] ss:$16 sps:$4 sm:$0xff]   ;;  %v502_v15 = vld [vmem:[%s808_s1 + $0x60] ss:$16 sps:$4 sm:$0xff]  }
   0x6   :  { %v503_v16 = vld [vmem:[%s808_s1 + $0x68] ss:$16 sps:$4 sm:$0xff]   ;;  %v504_v17 = vld [vmem:[%s808_s1 + $0x84] ss:$16 sps:$4 sm:$0xff]   ;;  %v506_v18 = vld [vmem:[%s808_s1 + $0x8c] ss:$16 sps:$4 sm:$0xff]  }
   0x7   :  { %264 = vmatpush1.bf16.msra.mxu0 %v490_v7  ;;  %337 = vmatpush1.bf16.msra.mxu1 %v491_v8  ;;  %v508_v19 = vld [vmem:[%s808_s1 + $0x80] ss:$16 sps:$4 sm:$0xff]   ;;  %v509_v20 = vld [vmem:[%s808_s1 + $0x88] ss:$16 sps:$4 sm:$0xff]   ;;  %v510_v21 = vld [vmem:[%s808_s1 + $0xa4] ss:$16 sps:$4 sm:$0xff]  }
   0x8   :  { %265 = vmatprep.subr.bf16.mxu0 %v492_v9  ;;  %338 = vmatprep.subr.bf16.mxu1 %v494_v10  ;;  %v512_v22 = vld [vmem:[%s808_s1 + $0xac] ss:$16 sps:$4 sm:$0xff]   ;;  %v514_v23 = vld [vmem:[%s808_s1 + $0xa0] ss:$16 sps:$4 sm:$0xff]   ;;  %v515_v24 = vld [vmem:[%s808_s1 + $0xa8] ss:$16 sps:$4 sm:$0xff]  }
   0x9   :  { %v516_v25 = vld [vmem:[%s808_s1 + $0xc4] ss:$16 sps:$4 sm:$0xff]   ;;  %v518_v26 = vld [vmem:[%s808_s1 + $0xcc] ss:$16 sps:$4 sm:$0xff]   ;;  %v520_v27 = vld [vmem:[%s808_s1 + $0xc0] ss:$16 sps:$4 sm:$0xff]  }
   0xa   :  { %v521_v28 = vld [vmem:[%s808_s1 + $0xc8] ss:$16 sps:$4 sm:$0xff]   ;;  %v522_v29 = vld [vmem:[%s808_s1 + $0xe4] ss:$16 sps:$4 sm:$0xff]   ;;  %v524_v30 = vld [vmem:[%s808_s1 + $0xec] ss:$16 sps:$4 sm:$0xff]  }
   0xb   :  { %266 = vmatpush1.bf16.msra.mxu0 %v496_v11  ;;  %339 = vmatpush1.bf16.msra.mxu1 %v497_v12  ;;  %v526_v31 = vld [vmem:[%s808_s1 + $0xe0] ss:$16 sps:$4 sm:$0xff]   ;;  %v527_v32 = vld [vmem:[%s808_s1 + $0xe8] ss:$16 sps:$4 sm:$0xff]   ;;  %v58_v38 = vshrl.u32 %v57_v37, 7 }
   0xc   :  { %267 = vmatprep.subr.bf16.mxu0 %v498_v13  ;;  %340 = vmatprep.subr.bf16.mxu1 %v500_v14  ;;  %v528_v33 = vld [vmem:[%s809_s0] sm:$0xff]   ;;  %v529_v34 = vld [vmem:[%s809_s0 + $0x8] sm:$0xff]   ;;  %v530_v35 = vld [vmem:[%s809_s0 + $0x10] sm:$0xff]  }
   0xd   :  { %v531_v36 = vld [vmem:[%s809_s0 + $0x18] sm:$0xff]   ;;  %v59_v39 = vsub.s32 0, %v58_v38  ;;  %v67_v40 = vsub.s32 2, %v58_v38  ;;  %v55_v41 = vld [vmem:[%s810_s2] sm:$0xf]  ;;  %v63_v42 = vsub.s32 1, %v58_v38 }
   0xe   :  { %v71_v43 = vsub.s32 3, %v58_v38 }
   0xf   :  { %268 = vmatpush1.bf16.msra.mxu0 %v502_v15  ;;  %341 = vmatpush1.bf16.msra.mxu1 %v503_v16  ;;  %v672_v44 = vrot.slane %v55_v41, %v59_v39  ;;  %v674_v45 = vrot.slane %v55_v41, %v67_v40  ;;  %v676_v46 = vrot.slane %v55_v41, %v63_v42 }
  0x10   :  { %269 = vmatprep.subr.bf16.mxu0 %v504_v17  ;;  %342 = vmatprep.subr.bf16.mxu1 %v506_v18  ;;  %v678_v47 = vrot.slane %v55_v41, %v71_v43 }
  0x13   :  { %270 = vmatpush1.bf16.msra.mxu0 %v508_v19  ;;  %343 = vmatpush1.bf16.msra.mxu1 %v509_v20 }
  0x14   :  { %271 = vmatprep.subr.bf16.mxu0 %v510_v21  ;;  %344 = vmatprep.subr.bf16.mxu1 %v512_v22 }
  0x17   :  { %272 = vmatpush1.bf16.msra.mxu0 %v514_v23  ;;  %345 = vmatpush1.bf16.msra.mxu1 %v515_v24 }
  0x18   :  { %273 = vmatprep.subr.bf16.mxu0 %v516_v25  ;;  %346 = vmatprep.subr.bf16.mxu1 %v518_v26 }
  0x1b   :  { %274 = vmatpush1.bf16.msra.mxu0 %v520_v27  ;;  %347 = vmatpush1.bf16.msra.mxu1 %v521_v28 }
  0x1c   :  { %275 = vmatprep.subr.bf16.mxu0 %v522_v29  ;;  %348 = vmatprep.subr.bf16.mxu1 %v524_v30 }
  0x1f   :  { %276 = vmatpush1.bf16.msra.mxu0 %v526_v31  ;;  %349 = vmatpush1.bf16.msra.mxu1 %v527_v32 }
  0x22   :  { %294 = vmatmul.mubr.bf16.vlgmr.msra.gmra.mrb[0].mxu0 %v528_v33  ;;  %367 = vmatmul.mubr.bf16.vlgmr.msra.gmra.mrb[0].mxu1 %v528_v33 }
  0x23   :  { %303 = vmatprep.mubr.bf16.mxu0 %v532_v1  ;;  %376 = vmatprep.mubr.bf16.mxu1 %v532_v1 }
  0x2a   :  { %304 = vmatmul.mubr.bf16.gmra.mrb[4].mxu0 %v529_v34  ;;  %377 = vmatmul.mubr.bf16.gmra.mrb[4].mxu1 %v529_v34 }
  0x2b   :  { %313 = vmatprep.mubr.bf16.mxu0 %v532_v1  ;;  %386 = vmatprep.mubr.bf16.mxu1 %v532_v1 }
  0x32   :  { %314 = vmatmul.mubr.bf16.gmra.mrb[8].mxu0 %v530_v35  ;;  %387 = vmatmul.mubr.bf16.gmra.mrb[8].mxu1 %v530_v35 }
  0x33   :  { %323 = vmatprep.mubr.bf16.mxu0 %v532_v1  ;;  %396 = vmatprep.mubr.bf16.mxu1 %v532_v1 }
  0x3a   :  { %324 = vmatmul.mubr.bf16.gmra.mrb[12].mxu0 %v531_v36  ;;  %397 = vmatmul.mubr.bf16.gmra.mrb[12].mxu1 %v531_v36 }
  0xf5   :  { %v295_v48 = vpop.f32.mrb[0].mxu0  ;;  %v368_v49 = vpop.f32.mrb[0].mxu1 }
  0xf6   :  { %v296_v50 = vadd.f32 %v295_v48, %v672_v44  ;;  %v369_v51 = vadd.f32 %v368_v49, %v674_v45  ;;  %v297_v52 = vpop.f32.mrb[1].mxu0  ;;  %v370_v53 = vpop.f32.mrb[1].mxu1 }
  0xf7   :  { %v298_v54 = vadd.f32 %v297_v52, %v676_v46  ;;  %v371_v55 = vadd.f32 %v370_v53, %v678_v47  ;;  %v299_v56 = vpop.f32.mrb[2].mxu0  ;;  %v372_v57 = vpop.f32.mrb[2].mxu1 }
  0xf8   :  { %407 = vst [vmem:[%s811_s3] sm:$0xff] %v296_v50  ;;  %409 = vst [vmem:[%s811_s3 + $0x10] sm:$0xff] %v369_v51  ;;  %v300_v58 = vadd.f32 %v299_v56, %v672_v44  ;;  %v373_v59 = vadd.f32 %v372_v57, %v674_v45  ;;  %v301_v60 = vpop.f32.mrb[3].mxu0  ;;  %v374_v61 = vpop.f32.mrb[3].mxu1 }
  0xf9   :  { %408 = vst [vmem:[%s811_s3 + $0x8] sm:$0xff] %v298_v54  ;;  %410 = vst [vmem:[%s811_s3 + $0x18] sm:$0xff] %v371_v55  ;;  %v302_v62 = vadd.f32 %v301_v60, %v676_v46  ;;  %v375_v63 = vadd.f32 %v374_v61, %v678_v47 }
  0xfa   :  { %411 = vst [vmem:[%s811_s3 + $0x20] sm:$0xff] %v300_v58  ;;  %413 = vst [vmem:[%s811_s3 + $0x30] sm:$0xff] %v373_v59 }
  0xfb   :  { %412 = vst [vmem:[%s811_s3 + $0x28] sm:$0xff] %v302_v62  ;;  %414 = vst [vmem:[%s811_s3 + $0x38] sm:$0xff] %v375_v63 }
  0xfd   :  { %v305_v0 = vpop.f32.mrb[4].mxu0  ;;  %v378_v1 = vpop.f32.mrb[4].mxu1 }
  0xfe   :  { %v306_v2 = vadd.f32 %v305_v0, %v672_v44  ;;  %v379_v3 = vadd.f32 %v378_v1, %v674_v45  ;;  %v307_v4 = vpop.f32.mrb[5].mxu0  ;;  %v380_v5 = vpop.f32.mrb[5].mxu1 }
  0xff   :  { %v308_v6 = vadd.f32 %v307_v4, %v676_v46  ;;  %v381_v7 = vadd.f32 %v380_v5, %v678_v47  ;;  %v309_v8 = vpop.f32.mrb[6].mxu0  ;;  %v382_v9 = vpop.f32.mrb[6].mxu1 }
 0x100   :  { %415 = vst [vmem:[%s811_s3 + $0x40] sm:$0xff] %v306_v2  ;;  %417 = vst [vmem:[%s811_s3 + $0x50] sm:$0xff] %v379_v3  ;;  %v310_v10 = vadd.f32 %v309_v8, %v672_v44  ;;  %v383_v11 = vadd.f32 %v382_v9, %v674_v45  ;;  %v311_v12 = vpop.f32.mrb[7].mxu0  ;;  %v384_v13 = vpop.f32.mrb[7].mxu1 }
 0x101   :  { %416 = vst [vmem:[%s811_s3 + $0x48] sm:$0xff] %v308_v6  ;;  %418 = vst [vmem:[%s811_s3 + $0x58] sm:$0xff] %v381_v7  ;;  %v312_v14 = vadd.f32 %v311_v12, %v676_v46  ;;  %v385_v15 = vadd.f32 %v384_v13, %v678_v47 }
 0x102   :  { %419 = vst [vmem:[%s811_s3 + $0x60] sm:$0xff] %v310_v10  ;;  %421 = vst [vmem:[%s811_s3 + $0x70] sm:$0xff] %v383_v11 }
 0x103   :  { %420 = vst [vmem:[%s811_s3 + $0x68] sm:$0xff] %v312_v14  ;;  %422 = vst [vmem:[%s811_s3 + $0x78] sm:$0xff] %v385_v15 }
 0x105   :  { %v315_v16 = vpop.f32.mrb[8].mxu0  ;;  %v388_v17 = vpop.f32.mrb[8].mxu1 }
 0x106   :  { %v316_v18 = vadd.f32 %v315_v16, %v672_v44  ;;  %v389_v19 = vadd.f32 %v388_v17, %v674_v45  ;;  %v317_v20 = vpop.f32.mrb[9].mxu0  ;;  %v390_v21 = vpop.f32.mrb[9].mxu1 }
 0x107   :  { %v318_v22 = vadd.f32 %v317_v20, %v676_v46  ;;  %v391_v23 = vadd.f32 %v390_v21, %v678_v47  ;;  %v319_v24 = vpop.f32.mrb[10].mxu0  ;;  %v392_v25 = vpop.f32.mrb[10].mxu1 }
 0x108   :  { %423 = vst [vmem:[%s811_s3 + $0x80] sm:$0xff] %v316_v18  ;;  %425 = vst [vmem:[%s811_s3 + $0x90] sm:$0xff] %v389_v19  ;;  %v320_v26 = vadd.f32 %v319_v24, %v672_v44  ;;  %v393_v27 = vadd.f32 %v392_v25, %v674_v45  ;;  %v321_v28 = vpop.f32.mrb[11].mxu0  ;;  %v394_v29 = vpop.f32.mrb[11].mxu1 }
 0x109   :  { %424 = vst [vmem:[%s811_s3 + $0x88] sm:$0xff] %v318_v22  ;;  %426 = vst [vmem:[%s811_s3 + $0x98] sm:$0xff] %v391_v23  ;;  %v322_v30 = vadd.f32 %v321_v28, %v676_v46  ;;  %v395_v31 = vadd.f32 %v394_v29, %v678_v47 }
 0x10a   :  { %427 = vst [vmem:[%s811_s3 + $0xa0] sm:$0xff] %v320_v26  ;;  %429 = vst [vmem:[%s811_s3 + $0xb0] sm:$0xff] %v393_v27 }
 0x10b   :  { %428 = vst [vmem:[%s811_s3 + $0xa8] sm:$0xff] %v322_v30  ;;  %430 = vst [vmem:[%s811_s3 + $0xb8] sm:$0xff] %v395_v31 }
 0x10d   :  { %v325_v32 = vpop.f32.mrb[12].mxu0  ;;  %v398_v33 = vpop.f32.mrb[12].mxu1 }
 0x10e   :  { %v326_v34 = vadd.f32 %v325_v32, %v672_v44  ;;  %v399_v35 = vadd.f32 %v398_v33, %v674_v45  ;;  %v327_v36 = vpop.f32.mrb[13].mxu0  ;;  %v400_v37 = vpop.f32.mrb[13].mxu1 }
 0x10f   :  { %v328_v38 = vadd.f32 %v327_v36, %v676_v46  ;;  %v401_v39 = vadd.f32 %v400_v37, %v678_v47  ;;  %v329_v40 = vpop.f32.mrb[14].mxu0  ;;  %v402_v41 = vpop.f32.mrb[14].mxu1 }
 0x110   :  { %431 = vst [vmem:[%s811_s3 + $0xc0] sm:$0xff] %v326_v34  ;;  %433 = vst [vmem:[%s811_s3 + $0xd0] sm:$0xff] %v399_v35  ;;  %v330_v42 = vadd.f32 %v329_v40, %v672_v44  ;;  %v403_v43 = vadd.f32 %v402_v41, %v674_v45  ;;  %v331_v48 = vpop.f32.mrb[15].mxu0  ;;  %v404_v49 = vpop.f32.mrb[15].mxu1 }
 0x111   :  { %432 = vst [vmem:[%s811_s3 + $0xc8] sm:$0xff] %v328_v38  ;;  %434 = vst [vmem:[%s811_s3 + $0xd8] sm:$0xff] %v401_v39  ;;  %v332_v50 = vadd.f32 %v331_v48, %v676_v46  ;;  %v405_v51 = vadd.f32 %v404_v49, %v678_v47 }
 0x112   :  { %435 = vst [vmem:[%s811_s3 + $0xe0] sm:$0xff] %v330_v42  ;;  %437 = vst [vmem:[%s811_s3 + $0xf0] sm:$0xff] %v403_v43 }
 0x113   :  { %436 = vst [vmem:[%s811_s3 + $0xe8] sm:$0xff] %v332_v50  ;;  %438 = vst [vmem:[%s811_s3 + $0xf8] sm:$0xff] %v405_v51 }

// kernel: lstm_forward.3
= control target key start
LH: loop header
LB: loop body
LE: loop exit
PB: predicated region body
PF: predicated region fallthrough
CT: control target
= control target key end

     0   :  { %v1654_v1 = vmov 0   ;;  %vm1656_vm0 = vmmov 0   ;;  %s2348_s1 = inlined_call_operand.vmem [shape: bf16[128,512], index: 1, kind: input, shape index: {}]   ;;  %s2349_s4 = inlined_call_operand.vmem [shape: f32[1,128], index: 4, kind: input, shape index: {}]   ;;  %s2350_s0 = inlined_call_operand.vmem [shape: f32[64,512], index: 0, kind: input, shape index: {}]   ;;  %s2351_s5 = inlined_call_operand.vmem [shape: f32[1,128], index: 5, kind: input, shape index: {}]   ;;  %s2352_s2 = inlined_call_operand.vmem [shape: bf16[128,128], index: 2, kind: input, shape index: {}]   ;;  %s2353_s3 = inlined_call_operand.vmem [shape: f32[1,128], index: 3, kind: input, shape index: {}]   ;;  %s2354_s6 = inlined_call_operand.vmem [shape: f32[8,128], index: 6, kind: output, shape index: {}]  }
   0x1   :  { %v1695_v0 = vld [vmem:[%s2348_s1 + $0x4] ss:$16 sps:$4 sm:$0xff]   ;;  %278 = vmatprep.mubr.bf16.mxu0 %v1654_v1  ;;  %319 = vmatprep.mubr.bf16.mxu1 %v1654_v1  ;;  %v1702_v2 = vld [vmem:[%s2348_s1] ss:$16 sps:$4 sm:$0xff]   ;;  %v1725_v6 = vld [vmem:[%s2348_s1 + $0xc] ss:$16 sps:$4 sm:$0xff]  }
   0x2   :  { %246 = vmatprep.subr.bf16.mxu0 %v1695_v0  ;;  %v1708_v3 = vld [vmem:[%s2348_s1 + $0x24] ss:$16 sps:$4 sm:$0xff]   ;;  %v1714_v4 = vld [vmem:[%s2348_s1 + $0x20] ss:$16 sps:$4 sm:$0xff]   ;;  %v1730_v7 = vld [vmem:[%s2348_s1 + $0x8] ss:$16 sps:$4 sm:$0xff]   ;;  %287 = vmatprep.subr.bf16.mxu1 %v1725_v6 }
   0x3   :  { %247 = vmatpush1.bf16.msra.mxu0 %v1702_v2  ;;  %v1720_v5 = vld [vmem:[%s2348_s1 + $0x44] ss:$16 sps:$4 sm:$0xff]   ;;  %v1736_v8 = vld [vmem:[%s2348_s1 + $0x40] ss:$16 sps:$4 sm:$0xff]   ;;  %288 = vmatpush1.bf16.msra.mxu1 %v1730_v7  ;;  %v1749_v10 = vld [vmem:[%s2348_s1 + $0x2c] ss:$16 sps:$4 sm:$0xff]  }
   0x4   :  { %248 = vmatprep.subr.bf16.mxu0 %v1708_v3  ;;  %v1743_v9 = vld [vmem:[%s2348_s1 + $0x64] ss:$16 sps:$4 sm:$0xff]   ;;  %v1754_v11 = vld [vmem:[%s2348_s1 + $0x28] ss:$16 sps:$4 sm:$0xff]   ;;  %289 = vmatprep.subr.bf16.mxu1 %v1749_v10  ;;  %v1761_v12 = vld [vmem:[%s2348_s1 + $0x60] ss:$16 sps:$4 sm:$0xff]  }
   0x5   :  { %v1766_v13 = vld [vmem:[%s2348_s1 + $0x84] ss:$16 sps:$4 sm:$0xff]   ;;  %v1771_v14 = vld [vmem:[%s2348_s1 + $0x4c] ss:$16 sps:$4 sm:$0xff]   ;;  %v1778_v15 = vld [vmem:[%s2348_s1 + $0x48] ss:$16 sps:$4 sm:$0xff]  }
   0x6   :  { %v1784_v16 = vld [vmem:[%s2348_s1 + $0x6c] ss:$16 sps:$4 sm:$0xff]   ;;  %v1790_v17 = vld [vmem:[%s2348_s1 + $0x80] ss:$16 sps:$4 sm:$0xff]   ;;  %v1796_v18 = vld [vmem:[%s2348_s1 + $0xa4] ss:$16 sps:$4 sm:$0xff]  }
   0x7   :  { %249 = vmatpush1.bf16.msra.mxu0 %v1714_v4  ;;  %290 = vmatpush1.bf16.msra.mxu1 %v1754_v11  ;;  %v1802_v19 = vld [vmem:[%s2348_s1 + $0x68] ss:$16 sps:$4 sm:$0xff]   ;;  %v1808_v20 = vld [vmem:[%s2348_s1 + $0x8c] ss:$16 sps:$4 sm:$0xff]   ;;  %v1813_v21 = vld [vmem:[%s2348_s1 + $0xa0] ss:$16 sps:$4 sm:$0xff]  }
   0x8   :  { %250 = vmatprep.subr.bf16.mxu0 %v1720_v5  ;;  %291 = vmatprep.subr.bf16.mxu1 %v1771_v14  ;;  %v1819_v22 = vld [vmem:[%s2348_s1 + $0xc4] ss:$16 sps:$4 sm:$0xff]   ;;  %v1826_v23 = vld [vmem:[%s2348_s1 + $0x88] ss:$16 sps:$4 sm:$0xff]   ;;  %v1832_v24 = vld [vmem:[%s2348_s1 + $0xac] ss:$16 sps:$4 sm:$0xff]  }
   0x9   :  { %v1838_v25 = vld [vmem:[%s2348_s1 + $0xc0] ss:$16 sps:$4 sm:$0xff]   ;;  %v1844_v26 = vld [vmem:[%s2348_s1 + $0xe4] ss:$16 sps:$4 sm:$0xff]   ;;  %v1850_v27 = vld [vmem:[%s2348_s1 + $0xa8] ss:$16 sps:$4 sm:$0xff]  }
   0xa   :  { %v1856_v28 = vld [vmem:[%s2348_s1 + $0xcc] ss:$16 sps:$4 sm:$0xff]   ;;  %v1862_v29 = vld [vmem:[%s2348_s1 + $0xe0] ss:$16 sps:$4 sm:$0xff]   ;;  %v1872_v31 = vld [vmem:[%s2348_s1 + $0xc8] ss:$16 sps:$4 sm:$0xff]  }
   0xb   :  { %251 = vmatpush1.bf16.msra.mxu0 %v1736_v8  ;;  %292 = vmatpush1.bf16.msra.mxu1 %v1778_v15  ;;  %v1311_v30 = vld [vmem:[%s2349_s4] ss:$0 sm:$0xff]  ;;  %v1878_v32 = vld [vmem:[%s2348_s1 + $0xec] ss:$16 sps:$4 sm:$0xff]   ;;  %v1885_v34 = vld [vmem:[%s2348_s1 + $0xe8] ss:$16 sps:$4 sm:$0xff]  }
   0xc   :  { %252 = vmatprep.subr.bf16.mxu0 %v1743_v9  ;;  %293 = vmatprep.subr.bf16.mxu1 %v1784_v16  ;;  %v85_v33 = vpack.c.bf16 %v1311_v30, %v1311_v30  ;;  %v81_v35 = vld [vmem:[%s2350_s0] sm:$0xff]  ;;  %v82_v36 = vld [vmem:[%s2350_s0 + $0x8] sm:$0xff]  ;;  %v84_v45 = vld [vmem:[%s2350_s0 + $0x18] sm:$0xff] }
   0xd   :  { %v83_v51 = vld [vmem:[%s2350_s0 + $0x10] sm:$0xff]  ;;  %v1312_v60 = vld [vmem:[%s2351_s5] ss:$0 sm:$0xff] }
   0xf   :  { %253 = vmatpush1.bf16.msra.mxu0 %v1761_v12  ;;  %294 = vmatpush1.bf16.msra.mxu1 %v1802_v19 }
  0x10   :  { %254 = vmatprep.subr.bf16.mxu0 %v1766_v13  ;;  %295 = vmatprep.subr.bf16.mxu1 %v1808_v20 }
  0x13   :  { %255 = vmatpush1.bf16.msra.mxu0 %v1790_v17  ;;  %296 = vmatpush1.bf16.msra.mxu1 %v1826_v23 }
  0x14   :  { %256 = vmatprep.subr.bf16.mxu0 %v1796_v18  ;;  %297 = vmatprep.subr.bf16.mxu1 %v1832_v24 }
  0x17   :  { %257 = vmatpush1.bf16.msra.mxu0 %v1813_v21  ;;  %298 = vmatpush1.bf16.msra.mxu1 %v1850_v27 }
  0x18   :  { %258 = vmatprep.subr.bf16.mxu0 %v1819_v22  ;;  %299 = vmatprep.subr.bf16.mxu1 %v1856_v28 }
  0x1b   :  { %259 = vmatpush1.bf16.msra.mxu0 %v1838_v25  ;;  %300 = vmatpush1.bf16.msra.mxu1 %v1872_v31 }
  0x1c   :  { %260 = vmatprep.subr.bf16.mxu0 %v1844_v26  ;;  %301 = vmatprep.subr.bf16.mxu1 %v1878_v32 }
  0x1f   :  { %261 = vmatpush1.bf16.msra.mxu0 %v1862_v29  ;;  %302 = vmatpush1.bf16.msra.mxu1 %v1885_v34 }
  0x20   :  { %364 = vmatprep.subr.bf16.mxu0 %v1695_v0  ;;  %405 = vmatprep.subr.bf16.mxu1 %v1725_v6 }
  0x22   :  { %279 = vmatmul.mubr.bf16.vlgmr.msra.gmra.mrb[0].mxu0 %v85_v33  ;;  %320 = vmatmul.mubr.bf16.vlgmr.msra.gmra.mrb[0].mxu1 %v85_v33 }
  0x23   :  { %365 = vmatpush1.bf16.msra.mxu0 %v1702_v2  ;;  %396 = vmatprep.mubr.bf16.mxu0 %v1654_v1 }
  0x24   :  { %366 = vmatprep.subr.bf16.mxu0 %v1708_v3  ;;  %406 = vmatpush1.bf16.msra.mxu1 %v1730_v7 }
  0x25   :  { %407 = vmatprep.subr.bf16.mxu1 %v1749_v10  ;;  %437 = vmatprep.mubr.bf16.mxu1 %v1654_v1 }
  0x27   :  { %367 = vmatpush1.bf16.msra.mxu0 %v1714_v4 }
  0x28   :  { %368 = vmatprep.subr.bf16.mxu0 %v1720_v5  ;;  %408 = vmatpush1.bf16.msra.mxu1 %v1754_v11 }
  0x29   :  { %409 = vmatprep.subr.bf16.mxu1 %v1771_v14 }
  0x2b   :  { %369 = vmatpush1.bf16.msra.mxu0 %v1736_v8 }
  0x2c   :  { %370 = vmatprep.subr.bf16.mxu0 %v1743_v9  ;;  %410 = vmatpush1.bf16.msra.mxu1 %v1778_v15 }
  0x2d   :  { %411 = vmatprep.subr.bf16.mxu1 %v1784_v16 }
  0x2f   :  { %371 = vmatpush1.bf16.msra.mxu0 %v1761_v12 }
  0x30   :  { %372 = vmatprep.subr.bf16.mxu0 %v1766_v13  ;;  %412 = vmatpush1.bf16.msra.mxu1 %v1802_v19 }
  0x31   :  { %413 = vmatprep.subr.bf16.mxu1 %v1808_v20 }
  0x33   :  { %373 = vmatpush1.bf16.msra.mxu0 %v1790_v17 }
  0x34   :  { %374 = vmatprep.subr.bf16.mxu0 %v1796_v18  ;;  %414 = vmatpush1.bf16.msra.mxu1 %v1826_v23 }
  0x35   :  { %415 = vmatprep.subr.bf16.mxu1 %v1832_v24 }
  0x37   :  { %375 = vmatpush1.bf16.msra.mxu0 %v1813_v21 }
  0x38   :  { %376 = vmatprep.subr.bf16.mxu0 %v1819_v22  ;;  %416 = vmatpush1.bf16.msra.mxu1 %v1850_v27 }
  0x39   :  { %417 = vmatprep.subr.bf16.mxu1 %v1856_v28 }
  0x3b   :  { %377 = vmatpush1.bf16.msra.mxu0 %v1838_v25 }
  0x3c   :  { %378 = vmatprep.subr.bf16.mxu0 %v1844_v26  ;;  %418 = vmatpush1.bf16.msra.mxu1 %v1872_v31 }
  0x3d   :  { %419 = vmatprep.subr.bf16.mxu1 %v1878_v32 }
  0x3f   :  { %379 = vmatpush1.bf16.msra.mxu0 %v1862_v29 }
  0x40   :  { %482 = vmatprep.subr.bf16.mxu0 %v1695_v0  ;;  %420 = vmatpush1.bf16.msra.mxu1 %v1885_v34 }
  0x41   :  { %523 = vmatprep.subr.bf16.mxu1 %v1725_v6 }
  0xf5   :  { %v280_v37 = vpop.f32.mrb[0].mxu0  ;;  %v321_v46 = vpop.f32.mrb[0].mxu1 }
  0xf6   :  { %v328_v38 = vadd.f32 %v280_v37, %v81_v35  ;;  %v282_v39 = vpop.f32.mrb[1].mxu0  ;;  %v323_v47 = vpop.f32.mrb[1].mxu1  ;;  %v330_v53 = vadd.f32 %v321_v46, %v83_v51 }
  0xf7   :  { %v329_v40 = vadd.f32 %v282_v39, %v82_v36  ;;  %v284_v41 = vpop.f32.mrb[2].mxu0  ;;  %v331_v48 = vadd.f32 %v323_v47, %v84_v45  ;;  %v325_v49 = vpop.f32.mrb[2].mxu1 }
  0xf8   :  { %v1345_v42 = vmul.f32 -1.442695, %v328_v38  ;;  %v285_v43 = vpop.f32.mrb[3].mxu0  ;;  %v326_v50 = vpop.f32.mrb[3].mxu1  ;;  %v1349_v41 = vld [vmem:[%s2350_s0 + $0x28] sm:$0xff] }
  0xf9   :  { %v1346_v44 = vmul.f32 -1.442695, %v329_v40  ;;  %v1347_v52 = vmul.f32 -1.442695, %v331_v48  ;;  %v1348_v40 = vld [vmem:[%s2350_s0 + $0x20] sm:$0xff] }
  0xfa   :  { %1494 = vpow2.f32 %v1345_v42 }
  0xfb   :  { %1496 = vpow2.f32 %v1346_v44 }
  0xfc   :  { %1498 = vpow2.f32 %v1347_v52 }
  0xfd   :  { %1500 = vtanh.f32 %v330_v53 }
 0x104   :  { %v1495_v54 = vpop.eup %1494 }
 0x105   :  { %v1497_v55 = vpop.eup %1496  ;;  %v335_v56 = vadd.f32 1.0, %v1495_v54  ;;  %v1351_v54 = vld [vmem:[%s2350_s0 + $0x38] sm:$0xff] }
 0x106   :  { %v341_v57 = vadd.f32 1.0, %v1497_v55  ;;  %v1499_v58 = vpop.eup %1498 }
 0x107   :  { %1502 = vrcp.f32 %v335_v56  ;;  %v1501_v59 = vpop.eup %1500  ;;  %v348_v62 = vadd.f32 1.0, %v1499_v58  ;;  %v1350_v56 = vld [vmem:[%s2350_s0 + $0x30] sm:$0xff] }
 0x108   :  { %1504 = vrcp.f32 %v341_v57 }
 0x109   :  { %1506 = vrcp.f32 %v348_v62 }
 0x111   :  { %v1503_v61 = vpop.eup %1502 }
 0x112   :  { %v1505_v63 = vpop.eup %1504  ;;  %v352_v30 = vmul.f32 %v1503_v61, %v1501_v59 }
 0x113   :  { %v351_v33 = vmul.f32 %v1505_v63, %v1312_v60  ;;  %v1507_v36 = vpop.eup %1506 }
 0x115   :  { %v1940_v35 = vadd.f32 %v352_v30, %v351_v33 }
 0x117   :  { %1508 = vtanh.f32 %v1940_v35 }
 0x121   :  { %v1509_v37 = vpop.eup %1508 }
 0x122   :  { %v355_v38 = vmul.f32 %v1509_v37, %v1507_v36 }
 0x124   :  { %v363_v39 = vpack.c.bf16 %v355_v38, %v355_v38 }
 0x126   :  { %397 = vmatmul.mubr.bf16.vlgmr.msra.gmra.mrb[4].mxu0 %v363_v39  ;;  %438 = vmatmul.mubr.bf16.vlgmr.msra.gmra.mrb[4].mxu1 %v363_v39 }
 0x127   :  { %483 = vmatpush1.bf16.msra.mxu0 %v1702_v2  ;;  %524 = vmatpush1.bf16.msra.mxu1 %v1730_v7 }
 0x128   :  { %484 = vmatprep.subr.bf16.mxu0 %v1708_v3  ;;  %525 = vmatprep.subr.bf16.mxu1 %v1749_v10 }
 0x129   :  { %514 = vmatprep.mubr.bf16.mxu0 %v1654_v1  ;;  %555 = vmatprep.mubr.bf16.mxu1 %v1654_v1 }
 0x12b   :  { %485 = vmatpush1.bf16.msra.mxu0 %v1714_v4  ;;  %526 = vmatpush1.bf16.msra.mxu1 %v1754_v11 }
 0x12c   :  { %486 = vmatprep.subr.bf16.mxu0 %v1720_v5  ;;  %527 = vmatprep.subr.bf16.mxu1 %v1771_v14 }
 0x12f   :  { %487 = vmatpush1.bf16.msra.mxu0 %v1736_v8  ;;  %528 = vmatpush1.bf16.msra.mxu1 %v1778_v15 }
 0x130   :  { %488 = vmatprep.subr.bf16.mxu0 %v1743_v9  ;;  %529 = vmatprep.subr.bf16.mxu1 %v1784_v16 }
 0x133   :  { %489 = vmatpush1.bf16.msra.mxu0 %v1761_v12  ;;  %530 = vmatpush1.bf16.msra.mxu1 %v1802_v19 }
 0x134   :  { %490 = vmatprep.subr.bf16.mxu0 %v1766_v13  ;;  %531 = vmatprep.subr.bf16.mxu1 %v1808_v20 }
 0x137   :  { %491 = vmatpush1.bf16.msra.mxu0 %v1790_v17  ;;  %532 = vmatpush1.bf16.msra.mxu1 %v1826_v23 }
 0x138   :  { %492 = vmatprep.subr.bf16.mxu0 %v1796_v18  ;;  %533 = vmatprep.subr.bf16.mxu1 %v1832_v24 }
 0x13b   :  { %493 = vmatpush1.bf16.msra.mxu0 %v1813_v21  ;;  %534 = vmatpush1.bf16.msra.mxu1 %v1850_v27 }
 0x13c   :  { %494 = vmatprep.subr.bf16.mxu0 %v1819_v22  ;;  %535 = vmatprep.subr.bf16.mxu1 %v1856_v28 }
 0x13f   :  { %495 = vmatpush1.bf16.msra.mxu0 %v1838_v25  ;;  %536 = vmatpush1.bf16.msra.mxu1 %v1872_v31 }
 0x140   :  { %496 = vmatprep.subr.bf16.mxu0 %v1844_v26  ;;  %537 = vmatprep.subr.bf16.mxu1 %v1878_v32 }
 0x143   :  { %497 = vmatpush1.bf16.msra.mxu0 %v1862_v29  ;;  %538 = vmatpush1.bf16.msra.mxu1 %v1885_v34 }
 0x144   :  { %600 = vmatprep.subr.bf16.mxu0 %v1695_v0  ;;  %641 = vmatprep.subr.bf16.mxu1 %v1725_v6 }
 0x1f9   :  { %v398_v42 = vpop.f32.mrb[4].mxu0  ;;  %v439_v43 = vpop.f32.mrb[4].mxu1 }
 0x1fa   :  { %v446_v44 = vadd.f32 %v1348_v40, %v398_v42  ;;  %v400_v45 = vpop.f32.mrb[5].mxu0  ;;  %v441_v46 = vpop.f32.mrb[5].mxu1  ;;  %v448_v58 = vadd.f32 %v1350_v56, %v439_v43 }
 0x1fb   :  { %v447_v47 = vadd.f32 %v1349_v41, %v400_v45  ;;  %v402_v48 = vpop.f32.mrb[6].mxu0  ;;  %v443_v49 = vpop.f32.mrb[6].mxu1  ;;  %v449_v55 = vadd.f32 %v1351_v54, %v441_v46  ;;  %v1356_v45 = vld [vmem:[%s2350_s0 + $0x48] sm:$0xff] }
 0x1fc   :  { %v1352_v50 = vmul.f32 -1.442695, %v446_v44  ;;  %v403_v51 = vpop.f32.mrb[7].mxu0  ;;  %v444_v52 = vpop.f32.mrb[7].mxu1 }
 0x1fd   :  { %v1353_v53 = vmul.f32 -1.442695, %v447_v47  ;;  %v1354_v57 = vmul.f32 -1.442695, %v449_v55 }
 0x1fe   :  { %1510 = vpow2.f32 %v1352_v50 }
 0x1ff   :  { %1512 = vpow2.f32 %v1353_v53 }
 0x200   :  { %1514 = vpow2.f32 %v1354_v57 }
 0x201   :  { %1516 = vtanh.f32 %v448_v58  ;;  %v1358_v58 = vld [vmem:[%s2350_s0 + $0x58] sm:$0xff] }
 0x208   :  { %v1511_v59 = vpop.eup %1510 }
 0x209   :  { %v1513_v60 = vpop.eup %1512  ;;  %v453_v61 = vadd.f32 1.0, %v1511_v59 }
 0x20a   :  { %v459_v62 = vadd.f32 1.0, %v1513_v60  ;;  %v1515_v63 = vpop.eup %1514  ;;  %v1357_v60 = vld [vmem:[%s2350_s0 + $0x50] sm:$0xff] }
 0x20b   :  { %1518 = vrcp.f32 %v453_v61  ;;  %v1517_v30 = vpop.eup %1516  ;;  %v466_v38 = vadd.f32 1.0, %v1515_v63 }
 0x20c   :  { %1520 = vrcp.f32 %v459_v62 }
 0x20d   :  { %1522 = vrcp.f32 %v466_v38 }
 0x215   :  { %v1519_v33 = vpop.eup %1518 }
 0x216   :  { %v1521_v36 = vpop.eup %1520  ;;  %v470_v37 = vmul.f32 %v1519_v33, %v1517_v30 }
 0x217   :  { %v469_v39 = vmul.f32 %v1521_v36, %v1940_v35  ;;  %v1523_v41 = vpop.eup %1522  ;;  %v1355_v35 = vld [vmem:[%s2350_s0 + $0x40] sm:$0xff] }
 0x219   :  { %v1990_v40 = vadd.f32 %v470_v37, %v469_v39 }
 0x21b   :  { %1524 = vtanh.f32 %v1990_v40 }
 0x225   :  { %v1525_v42 = vpop.eup %1524 }
 0x226   :  { %v473_v43 = vmul.f32 %v1525_v42, %v1523_v41 }
 0x228   :  { %v481_v44 = vpack.c.bf16 %v473_v43, %v473_v43 }
 0x22a   :  { %515 = vmatmul.mubr.bf16.vlgmr.msra.gmra.mrb[8].mxu0 %v481_v44  ;;  %556 = vmatmul.mubr.bf16.vlgmr.msra.gmra.mrb[8].mxu1 %v481_v44 }
 0x22b   :  { %601 = vmatpush1.bf16.msra.mxu0 %v1702_v2  ;;  %642 = vmatpush1.bf16.msra.mxu1 %v1730_v7 }
 0x22c   :  { %602 = vmatprep.subr.bf16.mxu0 %v1708_v3  ;;  %643 = vmatprep.subr.bf16.mxu1 %v1749_v10 }
 0x22d   :  { %632 = vmatprep.mubr.bf16.mxu0 %v1654_v1  ;;  %673 = vmatprep.mubr.bf16.mxu1 %v1654_v1 }
 0x22f   :  { %603 = vmatpush1.bf16.msra.mxu0 %v1714_v4  ;;  %644 = vmatpush1.bf16.msra.mxu1 %v1754_v11 }
 0x230   :  { %604 = vmatprep.subr.bf16.mxu0 %v1720_v5  ;;  %645 = vmatprep.subr.bf16.mxu1 %v1771_v14 }
 0x233   :  { %605 = vmatpush1.bf16.msra.mxu0 %v1736_v8  ;;  %646 = vmatpush1.bf16.msra.mxu1 %v1778_v15 }
 0x234   :  { %606 = vmatprep.subr.bf16.mxu0 %v1743_v9  ;;  %647 = vmatprep.subr.bf16.mxu1 %v1784_v16 }
 0x237   :  { %607 = vmatpush1.bf16.msra.mxu0 %v1761_v12  ;;  %648 = vmatpush1.bf16.msra.mxu1 %v1802_v19 }
 0x238   :  { %608 = vmatprep.subr.bf16.mxu0 %v1766_v13  ;;  %649 = vmatprep.subr.bf16.mxu1 %v1808_v20 }
 0x23b   :  { %609 = vmatpush1.bf16.msra.mxu0 %v1790_v17  ;;  %650 = vmatpush1.bf16.msra.mxu1 %v1826_v23 }
 0x23c   :  { %610 = vmatprep.subr.bf16.mxu0 %v1796_v18  ;;  %651 = vmatprep.subr.bf16.mxu1 %v1832_v24 }
 0x23f   :  { %611 = vmatpush1.bf16.msra.mxu0 %v1813_v21  ;;  %652 = vmatpush1.bf16.msra.mxu1 %v1850_v27 }
 0x240   :  { %612 = vmatprep.subr.bf16.mxu0 %v1819_v22  ;;  %653 = vmatprep.subr.bf16.mxu1 %v1856_v28 }
 0x243   :  { %613 = vmatpush1.bf16.msra.mxu0 %v1838_v25  ;;  %654 = vmatpush1.bf16.msra.mxu1 %v1872_v31 }
 0x244   :  { %614 = vmatprep.subr.bf16.mxu0 %v1844_v26  ;;  %655 = vmatprep.subr.bf16.mxu1 %v1878_v32 }
 0x247   :  { %615 = vmatpush1.bf16.msra.mxu0 %v1862_v29  ;;  %656 = vmatpush1.bf16.msra.mxu1 %v1885_v34 }
 0x248   :  { %718 = vmatprep.subr.bf16.mxu0 %v1695_v0  ;;  %759 = vmatprep.subr.bf16.mxu1 %v1725_v6 }
 0x2fd   :  { %v516_v46 = vpop.f32.mrb[8].mxu0  ;;  %v557_v47 = vpop.f32.mrb[8].mxu1 }
 0x2fe   :  { %v564_v48 = vadd.f32 %v1355_v35, %v516_v46  ;;  %v518_v49 = vpop.f32.mrb[9].mxu0  ;;  %v559_v50 = vpop.f32.mrb[9].mxu1  ;;  %v566_v62 = vadd.f32 %v1357_v60, %v557_v47 }
 0x2ff   :  { %v565_v51 = vadd.f32 %v1356_v45, %v518_v49  ;;  %v520_v52 = vpop.f32.mrb[10].mxu0  ;;  %v561_v53 = vpop.f32.mrb[10].mxu1  ;;  %v567_v59 = vadd.f32 %v1358_v58, %v559_v50  ;;  %v1363_v49 = vld [vmem:[%s2350_s0 + $0x68] sm:$0xff] }
 0x300   :  { %v1359_v54 = vmul.f32 -1.442695, %v564_v48  ;;  %v521_v55 = vpop.f32.mrb[11].mxu0  ;;  %v562_v56 = vpop.f32.mrb[11].mxu1 }
 0x301   :  { %v1360_v57 = vmul.f32 -1.442695, %v565_v51  ;;  %v1361_v61 = vmul.f32 -1.442695, %v567_v59 }
 0x302   :  { %1526 = vpow2.f32 %v1359_v54 }
 0x303   :  { %1528 = vpow2.f32 %v1360_v57 }
 0x304   :  { %1530 = vpow2.f32 %v1361_v61 }
 0x305   :  { %1532 = vtanh.f32 %v566_v62  ;;  %v1365_v62 = vld [vmem:[%s2350_s0 + $0x78] sm:$0xff] }
 0x30c   :  { %v1527_v63 = vpop.eup %1526 }
 0x30d   :  { %v1529_v30 = vpop.eup %1528  ;;  %v571_v33 = vadd.f32 1.0, %v1527_v63 }
 0x30e   :  { %v577_v36 = vadd.f32 1.0, %v1529_v30  ;;  %v1531_v37 = vpop.eup %1530  ;;  %v1364_v30 = vld [vmem:[%s2350_s0 + $0x70] sm:$0xff] }
 0x30f   :  { %1534 = vrcp.f32 %v571_v33  ;;  %v1533_v38 = vpop.eup %1532  ;;  %v584_v43 = vadd.f32 1.0, %v1531_v37 }
 0x310   :  { %1536 = vrcp.f32 %v577_v36 }
 0x311   :  { %1538 = vrcp.f32 %v584_v43 }
 0x319   :  { %v1535_v39 = vpop.eup %1534 }
 0x31a   :  { %v1537_v41 = vpop.eup %1536  ;;  %v588_v42 = vmul.f32 %v1535_v39, %v1533_v38 }
 0x31b   :  { %v587_v44 = vmul.f32 %v1537_v41, %v1990_v40  ;;  %v1539_v45 = vpop.eup %1538  ;;  %v1362_v40 = vld [vmem:[%s2350_s0 + $0x60] sm:$0xff] }
 0x31d   :  { %v2040_v35 = vadd.f32 %v588_v42, %v587_v44 }
 0x31f   :  { %1540 = vtanh.f32 %v2040_v35 }
 0x329   :  { %v1541_v46 = vpop.eup %1540 }
 0x32a   :  { %v591_v47 = vmul.f32 %v1541_v46, %v1539_v45 }
 0x32c   :  { %v599_v48 = vpack.c.bf16 %v591_v47, %v591_v47 }
 0x32e   :  { %633 = vmatmul.mubr.bf16.vlgmr.msra.gmra.mrb[12].mxu0 %v599_v48  ;;  %674 = vmatmul.mubr.bf16.vlgmr.msra.gmra.mrb[12].mxu1 %v599_v48 }
 0x32f   :  { %719 = vmatpush1.bf16.msra.mxu0 %v1702_v2  ;;  %760 = vmatpush1.bf16.msra.mxu1 %v1730_v7 }
 0x330   :  { %720 = vmatprep.subr.bf16.mxu0 %v1708_v3  ;;  %761 = vmatprep.subr.bf16.mxu1 %v1749_v10 }
 0x331   :  { %750 = vmatprep.mubr.bf16.mxu0 %v1654_v1  ;;  %791 = vmatprep.mubr.bf16.mxu1 %v1654_v1 }
 0x333   :  { %721 = vmatpush1.bf16.msra.mxu0 %v1714_v4  ;;  %762 = vmatpush1.bf16.msra.mxu1 %v1754_v11 }
 0x334   :  { %722 = vmatprep.subr.bf16.mxu0 %v1720_v5  ;;  %763 = vmatprep.subr.bf16.mxu1 %v1771_v14 }
 0x337   :  { %723 = vmatpush1.bf16.msra.mxu0 %v1736_v8  ;;  %764 = vmatpush1.bf16.msra.mxu1 %v1778_v15 }
 0x338   :  { %724 = vmatprep.subr.bf16.mxu0 %v1743_v9  ;;  %765 = vmatprep.subr.bf16.mxu1 %v1784_v16 }
 0x33b   :  { %725 = vmatpush1.bf16.msra.mxu0 %v1761_v12  ;;  %766 = vmatpush1.bf16.msra.mxu1 %v1802_v19 }
 0x33c   :  { %726 = vmatprep.subr.bf16.mxu0 %v1766_v13  ;;  %767 = vmatprep.subr.bf16.mxu1 %v1808_v20 }
 0x33f   :  { %727 = vmatpush1.bf16.msra.mxu0 %v1790_v17  ;;  %768 = vmatpush1.bf16.msra.mxu1 %v1826_v23 }
 0x340   :  { %728 = vmatprep.subr.bf16.mxu0 %v1796_v18  ;;  %769 = vmatprep.subr.bf16.mxu1 %v1832_v24 }
 0x343   :  { %729 = vmatpush1.bf16.msra.mxu0 %v1813_v21  ;;  %770 = vmatpush1.bf16.msra.mxu1 %v1850_v27 }
 0x344   :  { %730 = vmatprep.subr.bf16.mxu0 %v1819_v22  ;;  %771 = vmatprep.subr.bf16.mxu1 %v1856_v28 }
 0x347   :  { %731 = vmatpush1.bf16.msra.mxu0 %v1838_v25  ;;  %772 = vmatpush1.bf16.msra.mxu1 %v1872_v31 }
 0x348   :  { %732 = vmatprep.subr.bf16.mxu0 %v1844_v26  ;;  %773 = vmatprep.subr.bf16.mxu1 %v1878_v32 }
 0x34b   :  { %733 = vmatpush1.bf16.msra.mxu0 %v1862_v29  ;;  %774 = vmatpush1.bf16.msra.mxu1 %v1885_v34 }
 0x34c   :  { %836 = vmatprep.subr.bf16.mxu0 %v1695_v0  ;;  %877 = vmatprep.subr.bf16.mxu1 %v1725_v6 }
 0x401   :  { %v634_v50 = vpop.f32.mrb[12].mxu0  ;;  %v675_v51 = vpop.f32.mrb[12].mxu1 }
 0x402   :  { %v682_v52 = vadd.f32 %v1362_v40, %v634_v50  ;;  %v636_v53 = vpop.f32.mrb[13].mxu0  ;;  %v677_v54 = vpop.f32.mrb[13].mxu1  ;;  %v684_v36 = vadd.f32 %v1364_v30, %v675_v51  ;;  %v1372_v30 = vld [vmem:[%s2350_s0 + $0x98] sm:$0xff] }
 0x403   :  { %v683_v55 = vadd.f32 %v1363_v49, %v636_v53  ;;  %v638_v56 = vpop.f32.mrb[14].mxu0  ;;  %v679_v57 = vpop.f32.mrb[14].mxu1  ;;  %v685_v63 = vadd.f32 %v1365_v62, %v677_v54  ;;  %v1370_v53 = vld [vmem:[%s2350_s0 + $0x88] sm:$0xff] }
 0x404   :  { %v1366_v58 = vmul.f32 -1.442695, %v682_v52  ;;  %v639_v59 = vpop.f32.mrb[15].mxu0  ;;  %v680_v60 = vpop.f32.mrb[15].mxu1 }
 0x405   :  { %v1367_v61 = vmul.f32 -1.442695, %v683_v55  ;;  %v1368_v33 = vmul.f32 -1.442695, %v685_v63 }
 0x406   :  { %1542 = vpow2.f32 %v1366_v58 }
 0x407   :  { %1544 = vpow2.f32 %v1367_v61 }
 0x408   :  { %1546 = vpow2.f32 %v1368_v33 }
 0x409   :  { %1548 = vtanh.f32 %v684_v36  ;;  %v1371_v36 = vld [vmem:[%s2350_s0 + $0x90] sm:$0xff] }
 0x410   :  { %v1543_v37 = vpop.eup %1542 }
 0x411   :  { %v1545_v38 = vpop.eup %1544  ;;  %v689_v39 = vadd.f32 1.0, %v1543_v37 }
 0x412   :  { %v695_v41 = vadd.f32 1.0, %v1545_v38  ;;  %v1547_v42 = vpop.eup %1546 }
 0x413   :  { %1550 = vrcp.f32 %v689_v39  ;;  %v1549_v43 = vpop.eup %1548  ;;  %v702_v47 = vadd.f32 1.0, %v1547_v42 }
 0x414   :  { %1552 = vrcp.f32 %v695_v41 }
 0x415   :  { %1554 = vrcp.f32 %v702_v47 }
 0x41d   :  { %v1551_v44 = vpop.eup %1550 }
 0x41e   :  { %v1553_v45 = vpop.eup %1552  ;;  %v706_v46 = vmul.f32 %v1551_v44, %v1549_v43 }
 0x41f   :  { %v705_v48 = vmul.f32 %v1553_v45, %v2040_v35  ;;  %v1555_v49 = vpop.eup %1554  ;;  %v1369_v35 = vld [vmem:[%s2350_s0 + $0x80] sm:$0xff] }
 0x421   :  { %v2090_v40 = vadd.f32 %v706_v46, %v705_v48 }
 0x423   :  { %1556 = vtanh.f32 %v2090_v40 }
 0x42d   :  { %v1557_v50 = vpop.eup %1556 }
 0x42e   :  { %v709_v51 = vmul.f32 %v1557_v50, %v1555_v49 }
 0x430   :  { %v717_v52 = vpack.c.bf16 %v709_v51, %v709_v51 }
 0x432   :  { %751 = vmatmul.mubr.bf16.vlgmr.msra.gmra.mrb[16].mxu0 %v717_v52  ;;  %792 = vmatmul.mubr.bf16.vlgmr.msra.gmra.mrb[16].mxu1 %v717_v52 }
 0x433   :  { %837 = vmatpush1.bf16.msra.mxu0 %v1702_v2  ;;  %878 = vmatpush1.bf16.msra.mxu1 %v1730_v7 }
 0x434   :  { %838 = vmatprep.subr.bf16.mxu0 %v1708_v3  ;;  %879 = vmatprep.subr.bf16.mxu1 %v1749_v10 }
 0x435   :  { %868 = vmatprep.mubr.bf16.mxu0 %v1654_v1  ;;  %909 = vmatprep.mubr.bf16.mxu1 %v1654_v1 }
 0x437   :  { %839 = vmatpush1.bf16.msra.mxu0 %v1714_v4  ;;  %880 = vmatpush1.bf16.msra.mxu1 %v1754_v11 }
 0x438   :  { %840 = vmatprep.subr.bf16.mxu0 %v1720_v5  ;;  %881 = vmatprep.subr.bf16.mxu1 %v1771_v14 }
 0x43b   :  { %841 = vmatpush1.bf16.msra.mxu0 %v1736_v8  ;;  %882 = vmatpush1.bf16.msra.mxu1 %v1778_v15 }
 0x43c   :  { %842 = vmatprep.subr.bf16.mxu0 %v1743_v9  ;;  %883 = vmatprep.subr.bf16.mxu1 %v1784_v16 }
 0x43f   :  { %843 = vmatpush1.bf16.msra.mxu0 %v1761_v12  ;;  %884 = vmatpush1.bf16.msra.mxu1 %v1802_v19 }
 0x440   :  { %844 = vmatprep.subr.bf16.mxu0 %v1766_v13  ;;  %885 = vmatprep.subr.bf16.mxu1 %v1808_v20 }
 0x443   :  { %845 = vmatpush1.bf16.msra.mxu0 %v1790_v17  ;;  %886 = vmatpush1.bf16.msra.mxu1 %v1826_v23 }
 0x444   :  { %846 = vmatprep.subr.bf16.mxu0 %v1796_v18  ;;  %887 = vmatprep.subr.bf16.mxu1 %v1832_v24 }
 0x447   :  { %847 = vmatpush1.bf16.msra.mxu0 %v1813_v21  ;;  %888 = vmatpush1.bf16.msra.mxu1 %v1850_v27 }
 0x448   :  { %848 = vmatprep.subr.bf16.mxu0 %v1819_v22  ;;  %889 = vmatprep.subr.bf16.mxu1 %v1856_v28 }
 0x44b   :  { %849 = vmatpush1.bf16.msra.mxu0 %v1838_v25  ;;  %890 = vmatpush1.bf16.msra.mxu1 %v1872_v31 }
 0x44c   :  { %850 = vmatprep.subr.bf16.mxu0 %v1844_v26  ;;  %891 = vmatprep.subr.bf16.mxu1 %v1878_v32 }
 0x44f   :  { %851 = vmatpush1.bf16.msra.mxu0 %v1862_v29  ;;  %892 = vmatpush1.bf16.msra.mxu1 %v1885_v34 }
 0x450   :  { %954 = vmatprep.subr.bf16.mxu0 %v1695_v0  ;;  %995 = vmatprep.subr.bf16.mxu1 %v1725_v6 }
 0x505   :  { %v752_v54 = vpop.f32.mrb[16].mxu0  ;;  %v793_v55 = vpop.f32.mrb[16].mxu1 }
 0x506   :  { %v800_v56 = vadd.f32 %v1369_v35, %v752_v54  ;;  %v754_v57 = vpop.f32.mrb[17].mxu0  ;;  %v795_v58 = vpop.f32.mrb[17].mxu1  ;;  %v802_v38 = vadd.f32 %v1371_v36, %v793_v55  ;;  %v1631_v36 = vld [vmem:[%s2348_s1 + $0x4c] ss:$16 sps:$4 sm:$0xff]  }
 0x507   :  { %v801_v59 = vadd.f32 %v1370_v53, %v754_v57  ;;  %v756_v60 = vpop.f32.mrb[18].mxu0  ;;  %v797_v61 = vpop.f32.mrb[18].mxu1  ;;  %v803_v33 = vadd.f32 %v1372_v30, %v795_v58  ;;  %v1629_v30 = vld [vmem:[%s2348_s1 + $0x28] ss:$16 sps:$4 sm:$0xff]  }
 0x508   :  { %v1373_v62 = vmul.f32 -1.442695, %v800_v56  ;;  %v757_v0 = vpop.f32.mrb[19].mxu0  ;;  %v798_v63 = vpop.f32.mrb[19].mxu1  ;;  %v1624_v61 = vld [vmem:[%s2348_s1] ss:$16 sps:$4 sm:$0xff]  }
 0x509   :  { %v1374_v6 = vmul.f32 -1.442695, %v801_v59  ;;  %v1375_v37 = vmul.f32 -1.442695, %v803_v33  ;;  %v1626_v0 = vld [vmem:[%s2348_s1 + $0x24] ss:$16 sps:$4 sm:$0xff]  }
 0x50a   :  { %1558 = vpow2.f32 %v1373_v62  ;;  %v1625_v62 = vld [vmem:[%s2348_s1 + $0x8] ss:$16 sps:$4 sm:$0xff]   ;;  %v1627_v63 = vld [vmem:[%s2348_s1 + $0x2c] ss:$16 sps:$4 sm:$0xff]   ;;  %v1630_v33 = vld [vmem:[%s2348_s1 + $0x44] ss:$16 sps:$4 sm:$0xff]  }
 0x50b   :  { %1560 = vpow2.f32 %v1374_v6  ;;  %v1628_v6 = vld [vmem:[%s2348_s1 + $0x20] ss:$16 sps:$4 sm:$0xff]  }
 0x50c   :  { %1562 = vpow2.f32 %v1375_v37  ;;  %v1633_v37 = vld [vmem:[%s2348_s1 + $0x48] ss:$16 sps:$4 sm:$0xff]  }
 0x50d   :  { %1564 = vtanh.f32 %v802_v38  ;;  %v1634_v38 = vld [vmem:[%s2348_s1 + $0x64] ss:$16 sps:$4 sm:$0xff]  }
 0x514   :  { %v1559_v39 = vpop.eup %1558 }
 0x515   :  { %v1561_v41 = vpop.eup %1560  ;;  %v807_v42 = vadd.f32 1.0, %v1559_v39  ;;  %v1635_v39 = vld [vmem:[%s2348_s1 + $0x6c] ss:$16 sps:$4 sm:$0xff]  }
 0x516   :  { %v813_v43 = vadd.f32 1.0, %v1561_v41  ;;  %v1563_v44 = vpop.eup %1562  ;;  %v1636_v41 = vld [vmem:[%s2348_s1 + $0x60] ss:$16 sps:$4 sm:$0xff]  }
 0x517   :  { %1566 = vrcp.f32 %v807_v42  ;;  %v1565_v45 = vpop.eup %1564  ;;  %v820_v49 = vadd.f32 1.0, %v1563_v44  ;;  %v1637_v42 = vld [vmem:[%s2348_s1 + $0x68] ss:$16 sps:$4 sm:$0xff]   ;;  %v1639_v44 = vld [vmem:[%s2348_s1 + $0x8c] ss:$16 sps:$4 sm:$0xff]  }
 0x518   :  { %1568 = vrcp.f32 %v813_v43  ;;  %v1638_v43 = vld [vmem:[%s2348_s1 + $0x84] ss:$16 sps:$4 sm:$0xff]  }
 0x519   :  { %1570 = vrcp.f32 %v820_v49  ;;  %v1644_v49 = vld [vmem:[%s2348_s1 + $0xa0] ss:$16 sps:$4 sm:$0xff]  }
 0x521   :  { %v1567_v46 = vpop.eup %1566 }
 0x522   :  { %v1569_v47 = vpop.eup %1568  ;;  %v824_v48 = vmul.f32 %v1567_v46, %v1565_v45  ;;  %v1640_v45 = vld [vmem:[%s2348_s1 + $0x80] ss:$16 sps:$4 sm:$0xff]   ;;  %v1641_v46 = vld [vmem:[%s2348_s1 + $0x88] ss:$16 sps:$4 sm:$0xff]  }
 0x523   :  { %v823_v50 = vmul.f32 %v1569_v47, %v2090_v40  ;;  %v1571_v52 = vpop.eup %1570  ;;  %v1642_v47 = vld [vmem:[%s2348_s1 + $0xa4] ss:$16 sps:$4 sm:$0xff]  }
 0x525   :  { %v2140_v51 = vadd.f32 %v824_v48, %v823_v50  ;;  %v1643_v48 = vld [vmem:[%s2348_s1 + $0xac] ss:$16 sps:$4 sm:$0xff]   ;;  %v1645_v50 = vld [vmem:[%s2348_s1 + $0xa8] ss:$16 sps:$4 sm:$0xff]  }
 0x527   :  { %1572 = vtanh.f32 %v2140_v51 }
 0x531   :  { %v1573_v35 = vpop.eup %1572 }
 0x532   :  { %v827_v53 = vmul.f32 %v1573_v35, %v1571_v52  ;;  %v1647_v52 = vld [vmem:[%s2348_s1 + $0xcc] ss:$16 sps:$4 sm:$0xff]   ;;  %v1648_v35 = vld [vmem:[%s2348_s1 + $0xc0] ss:$16 sps:$4 sm:$0xff]  }
 0x534   :  { %v835_v54 = vpack.c.bf16 %v827_v53, %v827_v53  ;;  %v1649_v53 = vld [vmem:[%s2348_s1 + $0xc8] ss:$16 sps:$4 sm:$0xff]  }
 0x536   :  { %869 = vmatmul.mubr.bf16.vlgmr.msra.gmra.mrb[20].mxu0 %v835_v54  ;;  %910 = vmatmul.mubr.bf16.vlgmr.msra.gmra.mrb[20].mxu1 %v835_v54  ;;  %v1650_v54 = vld [vmem:[%s2348_s1 + $0xe4] ss:$16 sps:$4 sm:$0xff]  }
 0x537   :  { %955 = vmatpush1.bf16.msra.mxu0 %v1702_v2  ;;  %996 = vmatpush1.bf16.msra.mxu1 %v1730_v7  ;;  %v1622_v2 = vld [vmem:[%s2348_s1 + $0x4] ss:$16 sps:$4 sm:$0xff]  }
 0x538   :  { %956 = vmatprep.subr.bf16.mxu0 %v1708_v3  ;;  %997 = vmatprep.subr.bf16.mxu1 %v1749_v10  ;;  %v1623_v3 = vld [vmem:[%s2348_s1 + $0xc] ss:$16 sps:$4 sm:$0xff]  }
 0x539   :  { %986 = vmatprep.mubr.bf16.mxu0 %v1654_v1  ;;  %1027 = vmatprep.mubr.bf16.mxu1 %v1654_v1 }
 0x53b   :  { %957 = vmatpush1.bf16.msra.mxu0 %v1714_v4  ;;  %998 = vmatpush1.bf16.msra.mxu1 %v1754_v11  ;;  %v1376_v4 = vld [vmem:[%s2350_s0 + $0xa0] sm:$0xff] }
 0x53c   :  { %958 = vmatprep.subr.bf16.mxu0 %v1720_v5  ;;  %999 = vmatprep.subr.bf16.mxu1 %v1771_v14  ;;  %v1377_v5 = vld [vmem:[%s2350_s0 + $0xa8] sm:$0xff] }
 0x53f   :  { %959 = vmatpush1.bf16.msra.mxu0 %v1736_v8  ;;  %1000 = vmatpush1.bf16.msra.mxu1 %v1778_v15 }
 0x540   :  { %960 = vmatprep.subr.bf16.mxu0 %v1743_v9  ;;  %1001 = vmatprep.subr.bf16.mxu1 %v1784_v16 }
 0x543   :  { %961 = vmatpush1.bf16.msra.mxu0 %v1761_v12  ;;  %1002 = vmatpush1.bf16.msra.mxu1 %v1802_v19  ;;  %v1379_v19 = vld [vmem:[%s2350_s0 + $0xb8] sm:$0xff] }
 0x544   :  { %962 = vmatprep.subr.bf16.mxu0 %v1766_v13  ;;  %1003 = vmatprep.subr.bf16.mxu1 %v1808_v20 }
 0x547   :  { %963 = vmatpush1.bf16.msra.mxu0 %v1790_v17  ;;  %1004 = vmatpush1.bf16.msra.mxu1 %v1826_v23 }
 0x548   :  { %964 = vmatprep.subr.bf16.mxu0 %v1796_v18  ;;  %1005 = vmatprep.subr.bf16.mxu1 %v1832_v24 }
 0x54b   :  { %965 = vmatpush1.bf16.msra.mxu0 %v1813_v21  ;;  %1006 = vmatpush1.bf16.msra.mxu1 %v1850_v27  ;;  %v1378_v21 = vld [vmem:[%s2350_s0 + $0xb0] sm:$0xff] }
 0x54c   :  { %966 = vmatprep.subr.bf16.mxu0 %v1819_v22  ;;  %1007 = vmatprep.subr.bf16.mxu1 %v1856_v28 }
 0x54f   :  { %967 = vmatpush1.bf16.msra.mxu0 %v1838_v25  ;;  %1008 = vmatpush1.bf16.msra.mxu1 %v1872_v31 }
 0x550   :  { %968 = vmatprep.subr.bf16.mxu0 %v1844_v26  ;;  %1009 = vmatprep.subr.bf16.mxu1 %v1878_v32 }
 0x553   :  { %969 = vmatpush1.bf16.msra.mxu0 %v1862_v29  ;;  %1010 = vmatpush1.bf16.msra.mxu1 %v1885_v34 }
 0x554   :  { %1072 = vmatprep.subr.bf16.mxu0 %v1622_v2  ;;  %1113 = vmatprep.subr.bf16.mxu1 %v1623_v3  ;;  %v1651_v2 = vld [vmem:[%s2348_s1 + $0xec] ss:$16 sps:$4 sm:$0xff]   ;;  %v1652_v3 = vld [vmem:[%s2348_s1 + $0xe0] ss:$16 sps:$4 sm:$0xff]  }
 0x609   :  { %v870_v7 = vpop.f32.mrb[20].mxu0  ;;  %v911_v8 = vpop.f32.mrb[20].mxu1 }
 0x60a   :  { %v918_v9 = vadd.f32 %v1376_v4, %v870_v7  ;;  %v872_v10 = vpop.f32.mrb[21].mxu0  ;;  %v913_v11 = vpop.f32.mrb[21].mxu1  ;;  %v920_v23 = vadd.f32 %v1378_v21, %v911_v8  ;;  %v1653_v4 = vld [vmem:[%s2348_s1 + $0xe8] ss:$16 sps:$4 sm:$0xff]  }
 0x60b   :  { %v919_v12 = vadd.f32 %v1377_v5, %v872_v10  ;;  %v874_v13 = vpop.f32.mrb[22].mxu0  ;;  %v915_v14 = vpop.f32.mrb[22].mxu1  ;;  %v921_v20 = vadd.f32 %v1379_v19, %v913_v11  ;;  %v1383_v5 = vld [vmem:[%s2350_s0 + $0xc0] sm:$0xff]  ;;  %v1384_v7 = vld [vmem:[%s2350_s0 + $0xc8] sm:$0xff] }
 0x60c   :  { %v1380_v15 = vmul.f32 -1.442695, %v918_v9  ;;  %v875_v16 = vpop.f32.mrb[23].mxu0  ;;  %v916_v17 = vpop.f32.mrb[23].mxu1 }
 0x60d   :  { %v1381_v18 = vmul.f32 -1.442695, %v919_v12  ;;  %v1382_v22 = vmul.f32 -1.442695, %v921_v20  ;;  %v1386_v20 = vld [vmem:[%s2350_s0 + $0xd8] sm:$0xff] }
 0x60e   :  { %1574 = vpow2.f32 %v1380_v15 }
 0x60f   :  { %1576 = vpow2.f32 %v1381_v18 }
 0x610   :  { %1578 = vpow2.f32 %v1382_v22  ;;  %v1385_v22 = vld [vmem:[%s2350_s0 + $0xd0] sm:$0xff] }
 0x611   :  { %1580 = vtanh.f32 %v920_v23 }
 0x618   :  { %v1575_v24 = vpop.eup %1574 }
 0x619   :  { %v1577_v25 = vpop.eup %1576  ;;  %v925_v26 = vadd.f32 1.0, %v1575_v24 }
 0x61a   :  { %v931_v27 = vadd.f32 1.0, %v1577_v25  ;;  %v1579_v28 = vpop.eup %1578 }
 0x61b   :  { %1582 = vrcp.f32 %v925_v26  ;;  %v1581_v29 = vpop.eup %1580  ;;  %v938_v40 = vadd.f32 1.0, %v1579_v28 }
 0x61c   :  { %1584 = vrcp.f32 %v931_v27 }
 0x61d   :  { %1586 = vrcp.f32 %v938_v40 }
 0x625   :  { %v1583_v31 = vpop.eup %1582 }
 0x626   :  { %v1585_v32 = vpop.eup %1584  ;;  %v942_v34 = vmul.f32 %v1583_v31, %v1581_v29 }
 0x627   :  { %v941_v55 = vmul.f32 %v1585_v32, %v2140_v51  ;;  %v1587_v57 = vpop.eup %1586  ;;  %v1646_v51 = vld [vmem:[%s2348_s1 + $0xc4] ss:$16 sps:$4 sm:$0xff]  }
 0x629   :  { %v2194_v56 = vadd.f32 %v942_v34, %v941_v55 }
 0x62b   :  { %1588 = vtanh.f32 %v2194_v56 }
 0x635   :  { %v1589_v58 = vpop.eup %1588 }
 0x636   :  { %v945_v59 = vmul.f32 %v1589_v58, %v1587_v57 }
 0x638   :  { %v953_v60 = vpack.c.bf16 %v945_v59, %v945_v59 }
 0x63a   :  { %987 = vmatmul.mubr.bf16.vlgmr.msra.gmra.mrb[24].mxu0 %v953_v60  ;;  %1028 = vmatmul.mubr.bf16.vlgmr.msra.gmra.mrb[24].mxu1 %v953_v60 }
 0x63b   :  { %1073 = vmatpush1.bf16.msra.mxu0 %v1624_v61  ;;  %1114 = vmatpush1.bf16.msra.mxu1 %v1625_v62 }
 0x63c   :  { %1074 = vmatprep.subr.bf16.mxu0 %v1626_v0  ;;  %1115 = vmatprep.subr.bf16.mxu1 %v1627_v63  ;;  %v1486_v0 = vld [vmem:[%s2352_s2] sm:$0xff]   ;;  %v1655_v63 = vmov 0.0  }
 0x63d   :  { %1104 = vmatprep.mubr.bf16.mxu0 %v1654_v1  ;;  %1145 = vmatprep.mubr.bf16.mxu1 %v1654_v1  ;;  %v1632_v1 = vld [vmem:[%s2348_s1 + $0x40] ss:$16 sps:$4 sm:$0xff]  }
 0x63f   :  { %1075 = vmatpush1.bf16.msra.mxu0 %v1628_v6  ;;  %1116 = vmatpush1.bf16.msra.mxu1 %v1629_v30  ;;  %v1488_v6 = vld [vmem:[%s2352_s2 + $0x10] sm:$0xff]   ;;  %v1489_v30 = vld [vmem:[%s2352_s2 + $0x18] sm:$0xff]  }
 0x640   :  { %1076 = vmatprep.subr.bf16.mxu0 %v1630_v33  ;;  %1117 = vmatprep.subr.bf16.mxu1 %v1631_v36  ;;  %v1490_v33 = vld [vmem:[%s2352_s2 + $0x20] sm:$0xff]   ;;  %v1491_v36 = vld [vmem:[%s2352_s2 + $0x28] sm:$0xff]  }
 0x643   :  { %1077 = vmatpush1.bf16.msra.mxu0 %v1632_v1  ;;  %1118 = vmatpush1.bf16.msra.mxu1 %v1633_v37  ;;  %v1492_v1 = vld [vmem:[%s2352_s2 + $0x30] sm:$0xff]   ;;  %v1493_v37 = vld [vmem:[%s2352_s2 + $0x38] sm:$0xff]  }
 0x644   :  { %1078 = vmatprep.subr.bf16.mxu0 %v1634_v38  ;;  %1119 = vmatprep.subr.bf16.mxu1 %v1635_v39  ;;  %v1390_v38 = vld [vmem:[%s2350_s0 + $0xe0] sm:$0xff]  ;;  %v1391_v39 = vld [vmem:[%s2350_s0 + $0xe8] sm:$0xff] }
 0x647   :  { %1079 = vmatpush1.bf16.msra.mxu0 %v1636_v41  ;;  %1120 = vmatpush1.bf16.msra.mxu1 %v1637_v42 }
 0x648   :  { %1080 = vmatprep.subr.bf16.mxu0 %v1638_v43  ;;  %1121 = vmatprep.subr.bf16.mxu1 %v1639_v44 }
 0x64b   :  { %1081 = vmatpush1.bf16.msra.mxu0 %v1640_v45  ;;  %1122 = vmatpush1.bf16.msra.mxu1 %v1641_v46 }
 0x64c   :  { %1082 = vmatprep.subr.bf16.mxu0 %v1642_v47  ;;  %1123 = vmatprep.subr.bf16.mxu1 %v1643_v48 }
 0x64f   :  { %1083 = vmatpush1.bf16.msra.mxu0 %v1644_v49  ;;  %1124 = vmatpush1.bf16.msra.mxu1 %v1645_v50 }
 0x650   :  { %1084 = vmatprep.subr.bf16.mxu0 %v1646_v51  ;;  %1125 = vmatprep.subr.bf16.mxu1 %v1647_v52 }
 0x653   :  { %1085 = vmatpush1.bf16.msra.mxu0 %v1648_v35  ;;  %1126 = vmatpush1.bf16.msra.mxu1 %v1649_v53  ;;  %v1393_v35 = vld [vmem:[%s2350_s0 + $0xf8] sm:$0xff] }
 0x654   :  { %1086 = vmatprep.subr.bf16.mxu0 %v1650_v54  ;;  %1127 = vmatprep.subr.bf16.mxu1 %v1651_v2  ;;  %v1392_v54 = vld [vmem:[%s2350_s0 + $0xf0] sm:$0xff] }
 0x657   :  { %1087 = vmatpush1.bf16.msra.mxu0 %v1652_v3  ;;  %1128 = vmatpush1.bf16.msra.mxu1 %v1653_v4 }
 0x658   :  { %1415 = vmatprep.subr.bf16.mxu0 %v1655_v63 }
 0x70d   :  { %v988_v8 = vpop.f32.mrb[24].mxu0  ;;  %v1029_v9 = vpop.f32.mrb[24].mxu1 }
 0x70e   :  { %v1036_v10 = vadd.f32 %v1383_v5, %v988_v8  ;;  %v990_v11 = vpop.f32.mrb[25].mxu0  ;;  %v1031_v12 = vpop.f32.mrb[25].mxu1  ;;  %v1038_v24 = vadd.f32 %v1385_v22, %v1029_v9 }
 0x70f   :  { %v1037_v13 = vadd.f32 %v1384_v7, %v990_v11  ;;  %v992_v14 = vpop.f32.mrb[26].mxu0  ;;  %v1033_v15 = vpop.f32.mrb[26].mxu1  ;;  %v1039_v21 = vadd.f32 %v1386_v20, %v1031_v12 }
 0x710   :  { %v1387_v16 = vmul.f32 -1.442695, %v1036_v10  ;;  %v993_v17 = vpop.f32.mrb[27].mxu0  ;;  %v1034_v18 = vpop.f32.mrb[27].mxu1 }
 0x711   :  { %v1388_v19 = vmul.f32 -1.442695, %v1037_v13  ;;  %v1389_v23 = vmul.f32 -1.442695, %v1039_v21  ;;  %v1397_v21 = vld [vmem:[%s2353_s3] ss:$0 sm:$0xff] }
 0x712   :  { %1590 = vpow2.f32 %v1387_v16 }
 0x713   :  { %1592 = vpow2.f32 %v1388_v19 }
 0x714   :  { %1594 = vpow2.f32 %v1389_v23 }
 0x715   :  { %1596 = vtanh.f32 %v1038_v24 }
 0x71c   :  { %v1591_v25 = vpop.eup %1590 }
 0x71d   :  { %v1593_v26 = vpop.eup %1592  ;;  %v1043_v27 = vadd.f32 1.0, %v1591_v25 }
 0x71e   :  { %v1049_v28 = vadd.f32 1.0, %v1593_v26  ;;  %v1595_v29 = vpop.eup %1594 }
 0x71f   :  { %1598 = vrcp.f32 %v1043_v27  ;;  %v1597_v31 = vpop.eup %1596  ;;  %v1056_v55 = vadd.f32 1.0, %v1595_v29 }
 0x720   :  { %1600 = vrcp.f32 %v1049_v28 }
 0x721   :  { %1602 = vrcp.f32 %v1056_v55 }
 0x729   :  { %v1599_v32 = vpop.eup %1598 }
 0x72a   :  { %v1601_v34 = vpop.eup %1600  ;;  %v1060_v40 = vmul.f32 %v1599_v32, %v1597_v31 }
 0x72b   :  { %v1059_v57 = vmul.f32 %v1601_v34, %v2194_v56  ;;  %v1603_v59 = vpop.eup %1602  ;;  %v1487_v56 = vld [vmem:[%s2352_s2 + $0x8] sm:$0xff]  }
 0x72d   :  { %v2302_v58 = vadd.f32 %v1060_v40, %v1059_v57 }
 0x72f   :  { %1604 = vtanh.f32 %v2302_v58 }
 0x739   :  { %v1605_v60 = vpop.eup %1604 }
 0x73a   :  { %v1063_v61 = vmul.f32 %v1605_v60, %v1603_v59 }
 0x73c   :  { %v1071_v62 = vpack.c.bf16 %v1063_v61, %v1063_v61 }
 0x73e   :  { %1105 = vmatmul.mubr.bf16.vlgmr.msra.gmra.mrb[28].mxu0 %v1071_v62  ;;  %1146 = vmatmul.mubr.bf16.vlgmr.msra.gmra.mrb[28].mxu1 %v1071_v62 }
 0x73f   :  { %1416 = vmatpush3.bf16.msra.mxu0 %v1486_v0  ;;  %1431 = vmatprep.mubr.msk.bf16.mxu0 %vm1656_vm0, %v1655_v63 }
 0x740   :  { %1417 = vmatprep.subr.bf16.mxu0 %v1655_v63 }
 0x743   :  { %1418 = vmatpush3.bf16.msra.mxu0 %v1487_v56 }
 0x744   :  { %1419 = vmatprep.subr.bf16.mxu0 %v1655_v63 }
 0x747   :  { %1420 = vmatpush3.bf16.msra.mxu0 %v1488_v6 }
 0x748   :  { %1421 = vmatprep.subr.bf16.mxu0 %v1655_v63 }
 0x74b   :  { %1422 = vmatpush3.bf16.msra.mxu0 %v1489_v30 }
 0x74c   :  { %1423 = vmatprep.subr.bf16.mxu0 %v1655_v63 }
 0x74f   :  { %1424 = vmatpush3.bf16.msra.mxu0 %v1490_v33 }
 0x750   :  { %1425 = vmatprep.subr.bf16.mxu0 %v1655_v63 }
 0x753   :  { %1426 = vmatpush3.bf16.msra.mxu0 %v1491_v36 }
 0x754   :  { %1427 = vmatprep.subr.bf16.mxu0 %v1655_v63 }
 0x757   :  { %1428 = vmatpush3.bf16.msra.mxu0 %v1492_v1 }
 0x758   :  { %1429 = vmatprep.subr.bf16.mxu0 %v1655_v63 }
 0x75b   :  { %1430 = vmatpush3.bf16.msra.mxu0 %v1493_v37 }
 0x811   :  { %v1106_v41 = vpop.f32.mrb[28].mxu0  ;;  %v1147_v42 = vpop.f32.mrb[28].mxu1 }
 0x812   :  { %v1154_v43 = vadd.f32 %v1390_v38, %v1106_v41  ;;  %v1108_v44 = vpop.f32.mrb[29].mxu0  ;;  %v1149_v45 = vpop.f32.mrb[29].mxu1  ;;  %v1156_v3 = vadd.f32 %v1392_v54, %v1147_v42 }
 0x813   :  { %v1155_v46 = vadd.f32 %v1391_v39, %v1108_v44  ;;  %v1110_v47 = vpop.f32.mrb[30].mxu0  ;;  %v1151_v48 = vpop.f32.mrb[30].mxu1  ;;  %v1157_v53 = vadd.f32 %v1393_v35, %v1149_v45 }
 0x814   :  { %v1394_v49 = vmul.f32 -1.442695, %v1154_v43  ;;  %v1111_v50 = vpop.f32.mrb[31].mxu0  ;;  %v1152_v51 = vpop.f32.mrb[31].mxu1 }
 0x815   :  { %v1395_v52 = vmul.f32 -1.442695, %v1155_v46  ;;  %v1396_v2 = vmul.f32 -1.442695, %v1157_v53 }
 0x816   :  { %1606 = vpow2.f32 %v1394_v49 }
 0x817   :  { %1608 = vpow2.f32 %v1395_v52 }
 0x818   :  { %1610 = vpow2.f32 %v1396_v2 }
 0x819   :  { %1612 = vtanh.f32 %v1156_v3 }
 0x820   :  { %v1607_v4 = vpop.eup %1606 }
 0x821   :  { %v1609_v5 = vpop.eup %1608  ;;  %v1161_v7 = vadd.f32 1.0, %v1607_v4 }
 0x822   :  { %v1167_v8 = vadd.f32 1.0, %v1609_v5  ;;  %v1611_v9 = vpop.eup %1610 }
 0x823   :  { %1614 = vrcp.f32 %v1161_v7  ;;  %v1613_v10 = vpop.eup %1612  ;;  %v1174_v14 = vadd.f32 1.0, %v1611_v9 }
 0x824   :  { %1616 = vrcp.f32 %v1167_v8 }
 0x825   :  { %1618 = vrcp.f32 %v1174_v14 }
 0x82d   :  { %v1615_v11 = vpop.eup %1614 }
 0x82e   :  { %v1617_v12 = vpop.eup %1616  ;;  %v1178_v13 = vmul.f32 %v1615_v11, %v1613_v10 }
 0x82f   :  { %v1177_v15 = vmul.f32 %v1617_v12, %v2302_v58  ;;  %v1619_v17 = vpop.eup %1618 }
 0x831   :  { %v1179_v16 = vadd.f32 %v1178_v13, %v1177_v15 }
 0x833   :  { %1620 = vtanh.f32 %v1179_v16 }
 0x83d   :  { %v1621_v18 = vpop.eup %1620 }
 0x83e   :  { %v1181_v19 = vmul.f32 %v1621_v18, %v1619_v17 }
 0x840   :  { %v1187_v20 = vpack.c.bf16 %v1181_v19, %v1181_v19 }
 0x842   :  { %1432 = vmatmul.mubr.bf16.vlgmr.msra.gmra.mrb[32].mxu0 %v1187_v20 }
 0x915   :  { %v1293_v22 = vpop.f32.mrb[32].mxu0 }
 0x916   :  { %v1294_v23 = vadd.f32 %v1397_v21, %v1293_v22  ;;  %v1433_v24 = vpop.f32.mrb[33].mxu0 }
 0x917   :  { %v1296_v25 = vpop.f32.mrb[34].mxu0 }
 0x918   :  { %1299 = vst [vmem:[%s2354_s6] sm:$0xff] %v1294_v23  ;;  %v1434_v26 = vpop.f32.mrb[35].mxu0 }

</bundles_post_ra>
